<compile_context>
chip_gen: v5e
topology: v5e:2x2
jax: 0.10.0
libtpu: 0.0.40
codegen_flags: <defaults>
</compile_context>

<pallas_src>
import jax
import jax.numpy as jnp
from jax.experimental import pallas as pl
from jax.experimental.pallas import tpu as pltpu

HIDDEN = 128  # nn.LSTM(encoding_size, 128)


def lstm_kernel(x_ref, wih_ref, whh_ref, b_ref, wd_ref, bd_ref, out_ref, xproj_scr):
    S, Bblk, E = x_ref.shape
    H = HIDDEN
    mm_dtype = whh_ref.dtype  # matmul operand dtype (bf16 default / f32); accum is f32

    # ---- Prologue: whole-sequence input projection as ONE MXU matmul (off the
    # serial path). Bias is folded here so the recurrence only adds h @ W_hh. ----
    x2d = x_ref[...].astype(mm_dtype).reshape(S * Bblk, E)
    proj = (jnp.dot(x2d, wih_ref[...], preferred_element_type=jnp.float32)
            + b_ref[...])
    xproj_scr[...] = proj.reshape(S, Bblk, 4 * H)

    # NOTE: W_hh is re-read from VMEM by the MXU every step. Staging it once in the
    # MXU weight registers (pltpu.matmul_push_rhs + per-step matmul_acc_lhs/pop, and
    # MRB accumulation of xproj on v7x) would remove the weight push from the serial
    # chain, but the tile mapping is generation-specific, so the portable dot is kept.
    whh = whh_ref[...]

    # ---- Recurrence: only h @ W_hh^T is on the serial critical path ----
    def step(t, carry):
        h, c = carry
        gates = xproj_scr[t] + jnp.dot(h.astype(mm_dtype), whh,
                                       preferred_element_type=jnp.float32)
        # Gate order was permuted to (i, f, o, g) in the wrapper.
        sig_if = jax.nn.sigmoid(gates[:, :2 * H])
        i = sig_if[:, :H]
        f = sig_if[:, H:]
        g = jnp.tanh(gates[:, 3 * H:])
        c = f * c + i * g
        # sigmoid(o) issued after the c chain starts: EUP work interleaves with VPU.
        o = jax.nn.sigmoid(gates[:, 2 * H:3 * H])
        h = o * jnp.tanh(c)
        return h, c

    h0 = jnp.zeros((Bblk, H), jnp.float32)
    c0 = jnp.zeros((Bblk, H), jnp.float32)
    # Cap the unroll: h_t is a true dependence of matmul_{t+1}, so unrolling beyond a
    # handful of steps only costs instruction memory / compile time.
    h, _ = jax.lax.fori_loop(0, S, step, (h0, c0), unroll=min(S, 8))

    # ---- Dense head on the last hidden state (many-to-one: dense(out[-1])) ----
    out_ref[...] = (jnp.dot(h.astype(wd_ref.dtype), wd_ref[...],
                            preferred_element_type=jnp.float32) + bd_ref[...])


def many_to_one_lstm(x, w_ih, w_hh, b_ih, b_hh, w_dense, b_dense,
                     matmul_dtype=jnp.bfloat16, batch_block=None):
    """Forward pass of ManyToOneLSTM.

    x        : (S, B, E) float32, seq-major (PyTorch script permutes to (S, B, E)).
    w_ih     : (4H, E)  lstm.weight_ih_l0, PyTorch gate order (i, f, g, o)
    w_hh     : (4H, H)  lstm.weight_hh_l0
    b_ih/b_hh: (4H,)
    w_dense  : (O, H)   dense.weight
    b_dense  : (O,)
    matmul_dtype : operand dtype of the MXU matmuls (bf16 default; f32 = exact path).
                   Gates / cell / hidden state / accumulation are always f32.
    batch_block  : rows per grid step. Default None = one block (best on 1-TC v5e/v6e).
                   On v7x with padded batch >= 16, pass Bp // 2 to use both TensorCores.
    Returns dense(lstm(x)[-1]) of shape (B, O).
    """
    S, B, E = x.shape
    H = HIDDEN
    O = w_dense.shape[0]

    # Permute gate blocks (i, f, g, o) -> (i, f, o, g) so the i/f sigmoid columns are
    # contiguous and g sits last; all slices stay 128-lane aligned.
    def reorder(w):
        i, f, g, o = jnp.split(w, 4, axis=0)
        return jnp.concatenate([i, f, o, g], axis=0)

    w_ih_t = reorder(w_ih).T.astype(matmul_dtype)                  # (E, 4H)
    w_hh_t = reorder(w_hh).T.astype(matmul_dtype)                  # (H, 4H)
    b = reorder(b_ih + b_hh).reshape(1, 4 * H).astype(jnp.float32)

    # Pad batch to the f32 sublane tile (8); pad the dense output to a full 128-lane
    # tile so the final store is lane-dense / unmasked. Padding sliced off on return.
    Bp = max(8, ((B + 7) // 8) * 8)
    if batch_block is None:
        Bblk = Bp
    else:
        Bblk = max(8, ((batch_block + 7) // 8) * 8)
        Bp = ((Bp + Bblk - 1) // Bblk) * Bblk
    nblk = Bp // Bblk
    Op = ((O + 127) // 128) * 128

    # x stays f32 at the kernel boundary and is cast in-kernel: avoids bf16 (16-row)
    # sublane-packing constraints on the batch dimension; the extra cast is off the
    # serial path and the prologue matmul is a single throughput op.
    x_p = jnp.zeros((S, Bp, E), jnp.float32).at[:, :B, :].set(x.astype(jnp.float32))
    w_d_t = jnp.zeros((H, Op), matmul_dtype).at[:, :O].set(w_dense.T.astype(matmul_dtype))
    b_d = jnp.zeros((1, Op), jnp.float32).at[:, :O].set(b_dense.astype(jnp.float32))

    # VMEM budget: xproj slab + double-buffered x/out blocks + resident weights.
    # (For very long S on v7x's 64 MiB VMEM, chunk the prologue over S instead.)
    mm_size = jnp.dtype(matmul_dtype).itemsize
    slab_bytes = S * Bblk * 4 * H * 4
    x_blk_bytes = S * Bblk * E * 4
    out_blk_bytes = Bblk * Op * 4
    w_bytes = (E * 4 * H + H * 4 * H + H * Op) * mm_size + (4 * H + Op) * 4
    need = slab_bytes + 2 * (x_blk_bytes + out_blk_bytes) + 2 * w_bytes + (2 << 20)
    vmem_limit = int(min(max(need, 32 << 20), 100 << 20))

    out = pl.pallas_call(
        lstm_kernel,
        out_shape=jax.ShapeDtypeStruct((Bp, Op), jnp.float32),
        grid=(nblk,),
        in_specs=[
            pl.BlockSpec((S, Bblk, E), lambda bk: (0, bk, 0)),   # x (batch-blocked)
            pl.BlockSpec((E, 4 * H), lambda bk: (0, 0)),         # W_ih^T (resident)
            pl.BlockSpec((H, 4 * H), lambda bk: (0, 0)),         # W_hh^T (resident)
            pl.BlockSpec((1, 4 * H), lambda bk: (0, 0)),         # folded bias
            pl.BlockSpec((H, Op), lambda bk: (0, 0)),            # dense weight^T
            pl.BlockSpec((1, Op), lambda bk: (0, 0)),            # dense bias
        ],
        out_specs=pl.BlockSpec((Bblk, Op), lambda bk: (bk, 0)),
        scratch_shapes=[pltpu.VMEM((S, Bblk, 4 * H), jnp.float32)],
        compiler_params=pltpu.CompilerParams(
            dimension_semantics=("parallel",),
            vmem_limit_bytes=vmem_limit),
    )(x_p, w_ih_t, w_hh_t, b, w_d_t, b_d)
    return out[:B, :O]


def reference_lstm(x, w_ih, w_hh, b_ih, b_hh, w_dense, b_dense):
    """Pure-JAX reference mirroring PyTorch nn.LSTM + nn.Linear semantics."""
    S, B, E = x.shape
    H = HIDDEN
    h = jnp.zeros((B, H), jnp.float32)
    c = jnp.zeros((B, H), jnp.float32)
    b = b_ih + b_hh
    for t in range(S):
        gates = x[t] @ w_ih.T + h @ w_hh.T + b
        i = jax.nn.sigmoid(gates[:, 0 * H:1 * H])
        f = jax.nn.sigmoid(gates[:, 1 * H:2 * H])
        g = jnp.tanh(gates[:, 2 * H:3 * H])
        o = jax.nn.sigmoid(gates[:, 3 * H:4 * H])
        c = f * c + i * g
        h = o * jnp.tanh(c)
    return h @ w_dense.T + b_dense


if __name__ == "__main__":
    seq_len, batch, encoding_size, output_size = 8, 2, 16, 8
    H = HIDDEN

    key = jax.random.PRNGKey(0)
    ks = jax.random.split(key, 7)
    scale = 1.0 / jnp.sqrt(H)  # PyTorch default init: uniform(-1/sqrt(H), 1/sqrt(H))

    x = jax.random.normal(ks[0], (seq_len, batch, encoding_size), jnp.float32)

    # Parameters in PyTorch layout (gate order i, f, g, o).
    w_ih = jax.random.uniform(ks[1], (4 * H, encoding_size), jnp.float32, -scale, scale)
    w_hh = jax.random.uniform(ks[2], (4 * H, H), jnp.float32, -scale, scale)
    b_ih = jax.random.uniform(ks[3], (4 * H,), jnp.float32, -scale, scale)
    b_hh = jax.random.uniform(ks[4], (4 * H,), jnp.float32, -scale, scale)
    w_dense = jax.random.uniform(ks[5], (output_size, H), jnp.float32, -scale, scale)
    b_dense = jax.random.uniform(ks[6], (output_size,), jnp.float32, -scale, scale)

    # Production path: bf16 matmul operands (default), f32 state/accumulation.
    out_bf16 = jax.block_until_ready(
        many_to_one_lstm(x, w_ih, w_hh, b_ih, b_hh, w_dense, b_dense))
    # Exact-validation path: f32 matmul operands.
    out_f32 = jax.block_until_ready(
        many_to_one_lstm(x, w_ih, w_hh, b_ih, b_hh, w_dense, b_dense,
                         matmul_dtype=jnp.float32))

    ref = reference_lstm(x, w_ih, w_hh, b_ih, b_hh, w_dense, b_dense)
    assert out_bf16.shape == (batch, output_size)
    assert out_f32.shape == (batch, output_size)
    assert jnp.allclose(out_f32, ref, atol=1e-4, rtol=1e-4), \
        float(jnp.max(jnp.abs(out_f32 - ref)))
    assert jnp.allclose(out_bf16, ref, atol=5e-2, rtol=5e-2), \
        float(jnp.max(jnp.abs(out_bf16 - ref)))

    print("KERNEL_OK")
</pallas_src>

<mosaic_0001>
module attributes {stable_mosaic.version = 11 : i64} {
  func.func @lstm_kernel(%arg0: i32, %arg1: memref<8x8x16xf32, #tpu.memory_space<vmem>>, %arg2: memref<16x512xbf16, #tpu.memory_space<vmem>>, %arg3: memref<128x512xbf16, #tpu.memory_space<vmem>>, %arg4: memref<1x512xf32, #tpu.memory_space<vmem>>, %arg5: memref<128x128xbf16, #tpu.memory_space<vmem>>, %arg6: memref<1x128xf32, #tpu.memory_space<vmem>>, %arg7: memref<8x128xf32, #tpu.memory_space<vmem>>, %arg8: memref<8x8x512xf32, #tpu.memory_space<vmem>>) attributes {dimension_semantics = [#tpu.dimension_semantics<parallel>], iteration_bounds = array<i64: 1>, scalar_prefetch = 0 : i64, scratch_operands = 1 : i64, tpu.core_type = #tpu.core_type<tc>, window_params = [{transform_indices = @transform_0, window_bounds = array<i64: 8, 8, 16>}, {pipeline_mode = #tpu.pipeline_mode<synchronous>, transform_indices = @transform_1, window_bounds = array<i64: 16, 512>}, {pipeline_mode = #tpu.pipeline_mode<synchronous>, transform_indices = @transform_2, window_bounds = array<i64: 128, 512>}, {pipeline_mode = #tpu.pipeline_mode<synchronous>, transform_indices = @transform_3, window_bounds = array<i64: 1, 512>}, {pipeline_mode = #tpu.pipeline_mode<synchronous>, transform_indices = @transform_4, window_bounds = array<i64: 128, 128>}, {pipeline_mode = #tpu.pipeline_mode<synchronous>, transform_indices = @transform_5, window_bounds = array<i64: 1, 128>}, {transform_indices = @transform_6, window_bounds = array<i64: 8, 128>}]} {
    %c0 = arith.constant 0 : index
    %c0_0 = arith.constant 0 : index
    %c0_1 = arith.constant 0 : index
    %0 = vector.load %arg1[%c0, %c0_0, %c0_1] : memref<8x8x16xf32, #tpu.memory_space<vmem>>, vector<8x8x16xf32>
    %1 = arith.truncf %0 : vector<8x8x16xf32> to vector<8x8x16xbf16>
    %2 = vector.shape_cast %1 : vector<8x8x16xbf16> to vector<64x16xbf16>
    %c0_2 = arith.constant 0 : index
    %c0_3 = arith.constant 0 : index
    %3 = vector.load %arg2[%c0_2, %c0_3] : memref<16x512xbf16, #tpu.memory_space<vmem>>, vector<16x512xbf16>
    %cst = arith.constant dense<0.000000e+00> : vector<64x512xf32>
    %4 = tpu.matmul %2, %3, %cst {dimension_numbers = #tpu.dot_dimension_numbers<[1], [0], [0], [1], [0, 0, 1, 1], [], []>} : vector<64x16xbf16>, vector<16x512xbf16>, vector<64x512xf32> -> vector<64x512xf32>
    %c0_4 = arith.constant 0 : index
    %c0_5 = arith.constant 0 : index
    %5 = vector.load %arg4[%c0_4, %c0_5] : memref<1x512xf32, #tpu.memory_space<vmem>>, vector<1x512xf32>
    %6 = vector.broadcast %5 : vector<1x512xf32> to vector<64x512xf32>
    %7 = arith.addf %4, %6 : vector<64x512xf32>
    %8 = vector.shape_cast %7 : vector<64x512xf32> to vector<8x8x512xf32>
    %c0_6 = arith.constant 0 : index
    %c0_7 = arith.constant 0 : index
    %c0_8 = arith.constant 0 : index
    %9 = vector.load %arg8[%c0_6, %c0_7, %c0_8] : memref<8x8x512xf32, #tpu.memory_space<vmem>>, vector<8x8x512xf32>
    tpu.vector_store %arg8[%c0_6, %c0_7, %c0_8], %8 {strides = array<i32>} : memref<8x8x512xf32, #tpu.memory_space<vmem>>, vector<8x8x512xf32>,
    %c0_9 = arith.constant 0 : index
    %c0_10 = arith.constant 0 : index
    %10 = vector.load %arg3[%c0_9, %c0_10] : memref<128x512xbf16, #tpu.memory_space<vmem>>, vector<128x512xbf16>
    %cst_11 = arith.constant 0.000000e+00 : f32
    %11 = vector.broadcast %cst_11 : f32 to vector<8x128xf32>
    %cst_12 = arith.constant 0.000000e+00 : f32
    %12 = vector.broadcast %cst_12 : f32 to vector<8x128xf32>
    %c0_i32 = arith.constant 0 : i32
    %13 = arith.index_cast %c0_i32 : i32 to index
    %c0_13 = arith.constant 0 : index
    %c0_14 = arith.constant 0 : index
    %14 = vector.load %arg8[%13, %c0_13, %c0_14] : memref<8x8x512xf32, #tpu.memory_space<vmem>>, vector<1x8x512xf32>
    %15 = vector.shape_cast %14 : vector<1x8x512xf32> to vector<8x512xf32>
    %16 = arith.truncf %11 : vector<8x128xf32> to vector<8x128xbf16>
    %cst_15 = arith.constant dense<0.000000e+00> : vector<8x512xf32>
    %17 = tpu.matmul %16, %10, %cst_15 {dimension_numbers = #tpu.dot_dimension_numbers<[1], [0], [0], [1], [0, 0, 1, 1], [], []>} : vector<8x128xbf16>, vector<128x512xbf16>, vector<8x512xf32> -> vector<8x512xf32>
    %18 = arith.addf %15, %17 : vector<8x512xf32>
    %19 = vector.extract_strided_slice %18 {offsets = [0, 0], sizes = [8, 256], strides = [1, 1]} : vector<8x512xf32> to vector<8x256xf32>
    %20 = arith.negf %19 : vector<8x256xf32>
    %21 = math.exp %20 : vector<8x256xf32>
    %cst_16 = arith.constant 1.000000e+00 : f32
    %22 = vector.broadcast %cst_16 : f32 to vector<8x256xf32>
    %23 = arith.addf %22, %21 : vector<8x256xf32>
    %24 = arith.divf %22, %23 : vector<8x256xf32>
    %25 = vector.extract_strided_slice %24 {offsets = [0, 0], sizes = [8, 128], strides = [1, 1]} : vector<8x256xf32> to vector<8x128xf32>
    %26 = vector.extract_strided_slice %24 {offsets = [0, 128], sizes = [8, 128], strides = [1, 1]} : vector<8x256xf32> to vector<8x128xf32>
    %27 = vector.extract_strided_slice %18 {offsets = [0, 384], sizes = [8, 128], strides = [1, 1]} : vector<8x512xf32> to vector<8x128xf32>
    %28 = math.tanh %27 : vector<8x128xf32>
    %29 = arith.mulf %26, %12 : vector<8x128xf32>
    %30 = arith.mulf %25, %28 : vector<8x128xf32>
    %31 = arith.addf %29, %30 : vector<8x128xf32>
    %32 = vector.extract_strided_slice %18 {offsets = [0, 256], sizes = [8, 128], strides = [1, 1]} : vector<8x512xf32> to vector<8x128xf32>
    %33 = arith.negf %32 : vector<8x128xf32>
    %34 = math.exp %33 : vector<8x128xf32>
    %cst_17 = arith.constant 1.000000e+00 : f32
    %35 = vector.broadcast %cst_17 : f32 to vector<8x128xf32>
    %36 = arith.addf %35, %34 : vector<8x128xf32>
    %37 = arith.divf %35, %36 : vector<8x128xf32>
    %38 = math.tanh %31 : vector<8x128xf32>
    %39 = arith.mulf %37, %38 : vector<8x128xf32>
    %c1_i32 = arith.constant 1 : i32
    %40 = arith.index_cast %c1_i32 : i32 to index
    %c0_18 = arith.constant 0 : index
    %c0_19 = arith.constant 0 : index
    %41 = vector.load %arg8[%40, %c0_18, %c0_19] : memref<8x8x512xf32, #tpu.memory_space<vmem>>, vector<1x8x512xf32>
    %42 = vector.shape_cast %41 : vector<1x8x512xf32> to vector<8x512xf32>
    %43 = arith.truncf %39 : vector<8x128xf32> to vector<8x128xbf16>
    %cst_20 = arith.constant dense<0.000000e+00> : vector<8x512xf32>
    %44 = tpu.matmul %43, %10, %cst_20 {dimension_numbers = #tpu.dot_dimension_numbers<[1], [0], [0], [1], [0, 0, 1, 1], [], []>} : vector<8x128xbf16>, vector<128x512xbf16>, vector<8x512xf32> -> vector<8x512xf32>
    %45 = arith.addf %42, %44 : vector<8x512xf32>
    %46 = vector.extract_strided_slice %45 {offsets = [0, 0], sizes = [8, 256], strides = [1, 1]} : vector<8x512xf32> to vector<8x256xf32>
    %47 = arith.negf %46 : vector<8x256xf32>
    %48 = math.exp %47 : vector<8x256xf32>
    %cst_21 = arith.constant 1.000000e+00 : f32
    %49 = vector.broadcast %cst_21 : f32 to vector<8x256xf32>
    %50 = arith.addf %49, %48 : vector<8x256xf32>
    %51 = arith.divf %49, %50 : vector<8x256xf32>
    %52 = vector.extract_strided_slice %51 {offsets = [0, 0], sizes = [8, 128], strides = [1, 1]} : vector<8x256xf32> to vector<8x128xf32>
    %53 = vector.extract_strided_slice %51 {offsets = [0, 128], sizes = [8, 128], strides = [1, 1]} : vector<8x256xf32> to vector<8x128xf32>
    %54 = vector.extract_strided_slice %45 {offsets = [0, 384], sizes = [8, 128], strides = [1, 1]} : vector<8x512xf32> to vector<8x128xf32>
    %55 = math.tanh %54 : vector<8x128xf32>
    %56 = arith.mulf %53, %31 : vector<8x128xf32>
    %57 = arith.mulf %52, %55 : vector<8x128xf32>
    %58 = arith.addf %56, %57 : vector<8x128xf32>
    %59 = vector.extract_strided_slice %45 {offsets = [0, 256], sizes = [8, 128], strides = [1, 1]} : vector<8x512xf32> to vector<8x128xf32>
    %60 = arith.negf %59 : vector<8x128xf32>
    %61 = math.exp %60 : vector<8x128xf32>
    %cst_22 = arith.constant 1.000000e+00 : f32
    %62 = vector.broadcast %cst_22 : f32 to vector<8x128xf32>
    %63 = arith.addf %62, %61 : vector<8x128xf32>
    %64 = arith.divf %62, %63 : vector<8x128xf32>
    %65 = math.tanh %58 : vector<8x128xf32>
    %66 = arith.mulf %64, %65 : vector<8x128xf32>
    %c2_i32 = arith.constant 2 : i32
    %67 = arith.index_cast %c2_i32 : i32 to index
    %c0_23 = arith.constant 0 : index
    %c0_24 = arith.constant 0 : index
    %68 = vector.load %arg8[%67, %c0_23, %c0_24] : memref<8x8x512xf32, #tpu.memory_space<vmem>>, vector<1x8x512xf32>
    %69 = vector.shape_cast %68 : vector<1x8x512xf32> to vector<8x512xf32>
    %70 = arith.truncf %66 : vector<8x128xf32> to vector<8x128xbf16>
    %cst_25 = arith.constant dense<0.000000e+00> : vector<8x512xf32>
    %71 = tpu.matmul %70, %10, %cst_25 {dimension_numbers = #tpu.dot_dimension_numbers<[1], [0], [0], [1], [0, 0, 1, 1], [], []>} : vector<8x128xbf16>, vector<128x512xbf16>, vector<8x512xf32> -> vector<8x512xf32>
    %72 = arith.addf %69, %71 : vector<8x512xf32>
    %73 = vector.extract_strided_slice %72 {offsets = [0, 0], sizes = [8, 256], strides = [1, 1]} : vector<8x512xf32> to vector<8x256xf32>
    %74 = arith.negf %73 : vector<8x256xf32>
    %75 = math.exp %74 : vector<8x256xf32>
    %cst_26 = arith.constant 1.000000e+00 : f32
    %76 = vector.broadcast %cst_26 : f32 to vector<8x256xf32>
    %77 = arith.addf %76, %75 : vector<8x256xf32>
    %78 = arith.divf %76, %77 : vector<8x256xf32>
    %79 = vector.extract_strided_slice %78 {offsets = [0, 0], sizes = [8, 128], strides = [1, 1]} : vector<8x256xf32> to vector<8x128xf32>
    %80 = vector.extract_strided_slice %78 {offsets = [0, 128], sizes = [8, 128], strides = [1, 1]} : vector<8x256xf32> to vector<8x128xf32>
    %81 = vector.extract_strided_slice %72 {offsets = [0, 384], sizes = [8, 128], strides = [1, 1]} : vector<8x512xf32> to vector<8x128xf32>
    %82 = math.tanh %81 : vector<8x128xf32>
    %83 = arith.mulf %80, %58 : vector<8x128xf32>
    %84 = arith.mulf %79, %82 : vector<8x128xf32>
    %85 = arith.addf %83, %84 : vector<8x128xf32>
    %86 = vector.extract_strided_slice %72 {offsets = [0, 256], sizes = [8, 128], strides = [1, 1]} : vector<8x512xf32> to vector<8x128xf32>
    %87 = arith.negf %86 : vector<8x128xf32>
    %88 = math.exp %87 : vector<8x128xf32>
    %cst_27 = arith.constant 1.000000e+00 : f32
    %89 = vector.broadcast %cst_27 : f32 to vector<8x128xf32>
    %90 = arith.addf %89, %88 : vector<8x128xf32>
    %91 = arith.divf %89, %90 : vector<8x128xf32>
    %92 = math.tanh %85 : vector<8x128xf32>
    %93 = arith.mulf %91, %92 : vector<8x128xf32>
    %c3_i32 = arith.constant 3 : i32
    %94 = arith.index_cast %c3_i32 : i32 to index
    %c0_28 = arith.constant 0 : index
    %c0_29 = arith.constant 0 : index
    %95 = vector.load %arg8[%94, %c0_28, %c0_29] : memref<8x8x512xf32, #tpu.memory_space<vmem>>, vector<1x8x512xf32>
    %96 = vector.shape_cast %95 : vector<1x8x512xf32> to vector<8x512xf32>
    %97 = arith.truncf %93 : vector<8x128xf32> to vector<8x128xbf16>
    %cst_30 = arith.constant dense<0.000000e+00> : vector<8x512xf32>
    %98 = tpu.matmul %97, %10, %cst_30 {dimension_numbers = #tpu.dot_dimension_numbers<[1], [0], [0], [1], [0, 0, 1, 1], [], []>} : vector<8x128xbf16>, vector<128x512xbf16>, vector<8x512xf32> -> vector<8x512xf32>
    %99 = arith.addf %96, %98 : vector<8x512xf32>
    %100 = vector.extract_strided_slice %99 {offsets = [0, 0], sizes = [8, 256], strides = [1, 1]} : vector<8x512xf32> to vector<8x256xf32>
    %101 = arith.negf %100 : vector<8x256xf32>
    %102 = math.exp %101 : vector<8x256xf32>
    %cst_31 = arith.constant 1.000000e+00 : f32
    %103 = vector.broadcast %cst_31 : f32 to vector<8x256xf32>
    %104 = arith.addf %103, %102 : vector<8x256xf32>
    %105 = arith.divf %103, %104 : vector<8x256xf32>
    %106 = vector.extract_strided_slice %105 {offsets = [0, 0], sizes = [8, 128], strides = [1, 1]} : vector<8x256xf32> to vector<8x128xf32>
    %107 = vector.extract_strided_slice %105 {offsets = [0, 128], sizes = [8, 128], strides = [1, 1]} : vector<8x256xf32> to vector<8x128xf32>
    %108 = vector.extract_strided_slice %99 {offsets = [0, 384], sizes = [8, 128], strides = [1, 1]} : vector<8x512xf32> to vector<8x128xf32>
    %109 = math.tanh %108 : vector<8x128xf32>
    %110 = arith.mulf %107, %85 : vector<8x128xf32>
    %111 = arith.mulf %106, %109 : vector<8x128xf32>
    %112 = arith.addf %110, %111 : vector<8x128xf32>
    %113 = vector.extract_strided_slice %99 {offsets = [0, 256], sizes = [8, 128], strides = [1, 1]} : vector<8x512xf32> to vector<8x128xf32>
    %114 = arith.negf %113 : vector<8x128xf32>
    %115 = math.exp %114 : vector<8x128xf32>
    %cst_32 = arith.constant 1.000000e+00 : f32
    %116 = vector.broadcast %cst_32 : f32 to vector<8x128xf32>
    %117 = arith.addf %116, %115 : vector<8x128xf32>
    %118 = arith.divf %116, %117 : vector<8x128xf32>
    %119 = math.tanh %112 : vector<8x128xf32>
    %120 = arith.mulf %118, %119 : vector<8x128xf32>
    %c4_i32 = arith.constant 4 : i32
    %121 = arith.index_cast %c4_i32 : i32 to index
    %c0_33 = arith.constant 0 : index
    %c0_34 = arith.constant 0 : index
    %122 = vector.load %arg8[%121, %c0_33, %c0_34] : memref<8x8x512xf32, #tpu.memory_space<vmem>>, vector<1x8x512xf32>
    %123 = vector.shape_cast %122 : vector<1x8x512xf32> to vector<8x512xf32>
    %124 = arith.truncf %120 : vector<8x128xf32> to vector<8x128xbf16>
    %cst_35 = arith.constant dense<0.000000e+00> : vector<8x512xf32>
    %125 = tpu.matmul %124, %10, %cst_35 {dimension_numbers = #tpu.dot_dimension_numbers<[1], [0], [0], [1], [0, 0, 1, 1], [], []>} : vector<8x128xbf16>, vector<128x512xbf16>, vector<8x512xf32> -> vector<8x512xf32>
    %126 = arith.addf %123, %125 : vector<8x512xf32>
    %127 = vector.extract_strided_slice %126 {offsets = [0, 0], sizes = [8, 256], strides = [1, 1]} : vector<8x512xf32> to vector<8x256xf32>
    %128 = arith.negf %127 : vector<8x256xf32>
    %129 = math.exp %128 : vector<8x256xf32>
    %cst_36 = arith.constant 1.000000e+00 : f32
    %130 = vector.broadcast %cst_36 : f32 to vector<8x256xf32>
    %131 = arith.addf %130, %129 : vector<8x256xf32>
    %132 = arith.divf %130, %131 : vector<8x256xf32>
    %133 = vector.extract_strided_slice %132 {offsets = [0, 0], sizes = [8, 128], strides = [1, 1]} : vector<8x256xf32> to vector<8x128xf32>
    %134 = vector.extract_strided_slice %132 {offsets = [0, 128], sizes = [8, 128], strides = [1, 1]} : vector<8x256xf32> to vector<8x128xf32>
    %135 = vector.extract_strided_slice %126 {offsets = [0, 384], sizes = [8, 128], strides = [1, 1]} : vector<8x512xf32> to vector<8x128xf32>
    %136 = math.tanh %135 : vector<8x128xf32>
    %137 = arith.mulf %134, %112 : vector<8x128xf32>
    %138 = arith.mulf %133, %136 : vector<8x128xf32>
    %139 = arith.addf %137, %138 : vector<8x128xf32>
    %140 = vector.extract_strided_slice %126 {offsets = [0, 256], sizes = [8, 128], strides = [1, 1]} : vector<8x512xf32> to vector<8x128xf32>
    %141 = arith.negf %140 : vector<8x128xf32>
    %142 = math.exp %141 : vector<8x128xf32>
    %cst_37 = arith.constant 1.000000e+00 : f32
    %143 = vector.broadcast %cst_37 : f32 to vector<8x128xf32>
    %144 = arith.addf %143, %142 : vector<8x128xf32>
    %145 = arith.divf %143, %144 : vector<8x128xf32>
    %146 = math.tanh %139 : vector<8x128xf32>
    %147 = arith.mulf %145, %146 : vector<8x128xf32>
    %c5_i32 = arith.constant 5 : i32
    %148 = arith.index_cast %c5_i32 : i32 to index
    %c0_38 = arith.constant 0 : index
    %c0_39 = arith.constant 0 : index
    %149 = vector.load %arg8[%148, %c0_38, %c0_39] : memref<8x8x512xf32, #tpu.memory_space<vmem>>, vector<1x8x512xf32>
    %150 = vector.shape_cast %149 : vector<1x8x512xf32> to vector<8x512xf32>
    %151 = arith.truncf %147 : vector<8x128xf32> to vector<8x128xbf16>
    %cst_40 = arith.constant dense<0.000000e+00> : vector<8x512xf32>
    %152 = tpu.matmul %151, %10, %cst_40 {dimension_numbers = #tpu.dot_dimension_numbers<[1], [0], [0], [1], [0, 0, 1, 1], [], []>} : vector<8x128xbf16>, vector<128x512xbf16>, vector<8x512xf32> -> vector<8x512xf32>
    %153 = arith.addf %150, %152 : vector<8x512xf32>
    %154 = vector.extract_strided_slice %153 {offsets = [0, 0], sizes = [8, 256], strides = [1, 1]} : vector<8x512xf32> to vector<8x256xf32>
    %155 = arith.negf %154 : vector<8x256xf32>
    %156 = math.exp %155 : vector<8x256xf32>
    %cst_41 = arith.constant 1.000000e+00 : f32
    %157 = vector.broadcast %cst_41 : f32 to vector<8x256xf32>
    %158 = arith.addf %157, %156 : vector<8x256xf32>
    %159 = arith.divf %157, %158 : vector<8x256xf32>
    %160 = vector.extract_strided_slice %159 {offsets = [0, 0], sizes = [8, 128], strides = [1, 1]} : vector<8x256xf32> to vector<8x128xf32>
    %161 = vector.extract_strided_slice %159 {offsets = [0, 128], sizes = [8, 128], strides = [1, 1]} : vector<8x256xf32> to vector<8x128xf32>
    %162 = vector.extract_strided_slice %153 {offsets = [0, 384], sizes = [8, 128], strides = [1, 1]} : vector<8x512xf32> to vector<8x128xf32>
    %163 = math.tanh %162 : vector<8x128xf32>
    %164 = arith.mulf %161, %139 : vector<8x128xf32>
    %165 = arith.mulf %160, %163 : vector<8x128xf32>
    %166 = arith.addf %164, %165 : vector<8x128xf32>
    %167 = vector.extract_strided_slice %153 {offsets = [0, 256], sizes = [8, 128], strides = [1, 1]} : vector<8x512xf32> to vector<8x128xf32>
    %168 = arith.negf %167 : vector<8x128xf32>
    %169 = math.exp %168 : vector<8x128xf32>
    %cst_42 = arith.constant 1.000000e+00 : f32
    %170 = vector.broadcast %cst_42 : f32 to vector<8x128xf32>
    %171 = arith.addf %170, %169 : vector<8x128xf32>
    %172 = arith.divf %170, %171 : vector<8x128xf32>
    %173 = math.tanh %166 : vector<8x128xf32>
    %174 = arith.mulf %172, %173 : vector<8x128xf32>
    %c6_i32 = arith.constant 6 : i32
    %175 = arith.index_cast %c6_i32 : i32 to index
    %c0_43 = arith.constant 0 : index
    %c0_44 = arith.constant 0 : index
    %176 = vector.load %arg8[%175, %c0_43, %c0_44] : memref<8x8x512xf32, #tpu.memory_space<vmem>>, vector<1x8x512xf32>
    %177 = vector.shape_cast %176 : vector<1x8x512xf32> to vector<8x512xf32>
    %178 = arith.truncf %174 : vector<8x128xf32> to vector<8x128xbf16>
    %cst_45 = arith.constant dense<0.000000e+00> : vector<8x512xf32>
    %179 = tpu.matmul %178, %10, %cst_45 {dimension_numbers = #tpu.dot_dimension_numbers<[1], [0], [0], [1], [0, 0, 1, 1], [], []>} : vector<8x128xbf16>, vector<128x512xbf16>, vector<8x512xf32> -> vector<8x512xf32>
    %180 = arith.addf %177, %179 : vector<8x512xf32>
    %181 = vector.extract_strided_slice %180 {offsets = [0, 0], sizes = [8, 256], strides = [1, 1]} : vector<8x512xf32> to vector<8x256xf32>
    %182 = arith.negf %181 : vector<8x256xf32>
    %183 = math.exp %182 : vector<8x256xf32>
    %cst_46 = arith.constant 1.000000e+00 : f32
    %184 = vector.broadcast %cst_46 : f32 to vector<8x256xf32>
    %185 = arith.addf %184, %183 : vector<8x256xf32>
    %186 = arith.divf %184, %185 : vector<8x256xf32>
    %187 = vector.extract_strided_slice %186 {offsets = [0, 0], sizes = [8, 128], strides = [1, 1]} : vector<8x256xf32> to vector<8x128xf32>
    %188 = vector.extract_strided_slice %186 {offsets = [0, 128], sizes = [8, 128], strides = [1, 1]} : vector<8x256xf32> to vector<8x128xf32>
    %189 = vector.extract_strided_slice %180 {offsets = [0, 384], sizes = [8, 128], strides = [1, 1]} : vector<8x512xf32> to vector<8x128xf32>
    %190 = math.tanh %189 : vector<8x128xf32>
    %191 = arith.mulf %188, %166 : vector<8x128xf32>
    %192 = arith.mulf %187, %190 : vector<8x128xf32>
    %193 = arith.addf %191, %192 : vector<8x128xf32>
    %194 = vector.extract_strided_slice %180 {offsets = [0, 256], sizes = [8, 128], strides = [1, 1]} : vector<8x512xf32> to vector<8x128xf32>
    %195 = arith.negf %194 : vector<8x128xf32>
    %196 = math.exp %195 : vector<8x128xf32>
    %cst_47 = arith.constant 1.000000e+00 : f32
    %197 = vector.broadcast %cst_47 : f32 to vector<8x128xf32>
    %198 = arith.addf %197, %196 : vector<8x128xf32>
    %199 = arith.divf %197, %198 : vector<8x128xf32>
    %200 = math.tanh %193 : vector<8x128xf32>
    %201 = arith.mulf %199, %200 : vector<8x128xf32>
    %c7_i32 = arith.constant 7 : i32
    %202 = arith.index_cast %c7_i32 : i32 to index
    %c0_48 = arith.constant 0 : index
    %c0_49 = arith.constant 0 : index
    %203 = vector.load %arg8[%202, %c0_48, %c0_49] : memref<8x8x512xf32, #tpu.memory_space<vmem>>, vector<1x8x512xf32>
    %204 = vector.shape_cast %203 : vector<1x8x512xf32> to vector<8x512xf32>
    %205 = arith.truncf %201 : vector<8x128xf32> to vector<8x128xbf16>
    %cst_50 = arith.constant dense<0.000000e+00> : vector<8x512xf32>
    %206 = tpu.matmul %205, %10, %cst_50 {dimension_numbers = #tpu.dot_dimension_numbers<[1], [0], [0], [1], [0, 0, 1, 1], [], []>} : vector<8x128xbf16>, vector<128x512xbf16>, vector<8x512xf32> -> vector<8x512xf32>
    %207 = arith.addf %204, %206 : vector<8x512xf32>
    %208 = vector.extract_strided_slice %207 {offsets = [0, 0], sizes = [8, 256], strides = [1, 1]} : vector<8x512xf32> to vector<8x256xf32>
    %209 = arith.negf %208 : vector<8x256xf32>
    %210 = math.exp %209 : vector<8x256xf32>
    %cst_51 = arith.constant 1.000000e+00 : f32
    %211 = vector.broadcast %cst_51 : f32 to vector<8x256xf32>
    %212 = arith.addf %211, %210 : vector<8x256xf32>
    %213 = arith.divf %211, %212 : vector<8x256xf32>
    %214 = vector.extract_strided_slice %213 {offsets = [0, 0], sizes = [8, 128], strides = [1, 1]} : vector<8x256xf32> to vector<8x128xf32>
    %215 = vector.extract_strided_slice %213 {offsets = [0, 128], sizes = [8, 128], strides = [1, 1]} : vector<8x256xf32> to vector<8x128xf32>
    %216 = vector.extract_strided_slice %207 {offsets = [0, 384], sizes = [8, 128], strides = [1, 1]} : vector<8x512xf32> to vector<8x128xf32>
    %217 = math.tanh %216 : vector<8x128xf32>
    %218 = arith.mulf %215, %193 : vector<8x128xf32>
    %219 = arith.mulf %214, %217 : vector<8x128xf32>
    %220 = arith.addf %218, %219 : vector<8x128xf32>
    %221 = vector.extract_strided_slice %207 {offsets = [0, 256], sizes = [8, 128], strides = [1, 1]} : vector<8x512xf32> to vector<8x128xf32>
    %222 = arith.negf %221 : vector<8x128xf32>
    %223 = math.exp %222 : vector<8x128xf32>
    %cst_52 = arith.constant 1.000000e+00 : f32
    %224 = vector.broadcast %cst_52 : f32 to vector<8x128xf32>
    %225 = arith.addf %224, %223 : vector<8x128xf32>
    %226 = arith.divf %224, %225 : vector<8x128xf32>
    %227 = math.tanh %220 : vector<8x128xf32>
    %228 = arith.mulf %226, %227 : vector<8x128xf32>
    %c8_i32 = arith.constant 8 : i32
    %229 = arith.truncf %228 : vector<8x128xf32> to vector<8x128xbf16>
    %c0_53 = arith.constant 0 : index
    %c0_54 = arith.constant 0 : index
    %230 = vector.load %arg5[%c0_53, %c0_54] : memref<128x128xbf16, #tpu.memory_space<vmem>>, vector<128x128xbf16>
    %cst_55 = arith.constant dense<0.000000e+00> : vector<8x128xf32>
    %231 = tpu.matmul %229, %230, %cst_55 {dimension_numbers = #tpu.dot_dimension_numbers<[1], [0], [0], [1], [0, 0, 1, 1], [], []>} : vector<8x128xbf16>, vector<128x128xbf16>, vector<8x128xf32> -> vector<8x128xf32>
    %c0_56 = arith.constant 0 : index
    %c0_57 = arith.constant 0 : index
    %232 = vector.load %arg6[%c0_56, %c0_57] : memref<1x128xf32, #tpu.memory_space<vmem>>, vector<1x128xf32>
    %233 = vector.broadcast %232 : vector<1x128xf32> to vector<8x128xf32>
    %234 = arith.addf %231, %233 : vector<8x128xf32>
    %c0_58 = arith.constant 0 : index
    %c0_59 = arith.constant 0 : index
    %235 = vector.load %arg7[%c0_58, %c0_59] : memref<8x128xf32, #tpu.memory_space<vmem>>, vector<8x128xf32>
    tpu.vector_store %arg7[%c0_58, %c0_59], %234 {strides = array<i32>} : memref<8x128xf32, #tpu.memory_space<vmem>>, vector<8x128xf32>,
    return
  }
  func.func @transform_0(%arg0: i32) -> (i32, i32, i32) {
    %c0_i32 = arith.constant 0 : i32
    %c0_i32_0 = arith.constant 0 : i32
    %c0_i32_1 = arith.constant 0 : i32
    return %c0_i32, %arg0, %c0_i32_0 : i32, i32, i32
  }
  func.func @transform_1(%arg0: i32) -> (i32, i32) {
    %c0_i32 = arith.constant 0 : i32
    %c0_i32_0 = arith.constant 0 : i32
    %c0_i32_1 = arith.constant 0 : i32
    return %c0_i32, %c0_i32_0 : i32, i32
  }
  func.func @transform_2(%arg0: i32) -> (i32, i32) {
    %c0_i32 = arith.constant 0 : i32
    %c0_i32_0 = arith.constant 0 : i32
    %c0_i32_1 = arith.constant 0 : i32
    return %c0_i32, %c0_i32_0 : i32, i32
  }
  func.func @transform_3(%arg0: i32) -> (i32, i32) {
    %c0_i32 = arith.constant 0 : i32
    %c0_i32_0 = arith.constant 0 : i32
    %c0_i32_1 = arith.constant 0 : i32
    return %c0_i32, %c0_i32_0 : i32, i32
  }
  func.func @transform_4(%arg0: i32) -> (i32, i32) {
    %c0_i32 = arith.constant 0 : i32
    %c0_i32_0 = arith.constant 0 : i32
    %c0_i32_1 = arith.constant 0 : i32
    return %c0_i32, %c0_i32_0 : i32, i32
  }
  func.func @transform_5(%arg0: i32) -> (i32, i32) {
    %c0_i32 = arith.constant 0 : i32
    %c0_i32_0 = arith.constant 0 : i32
    %c0_i32_1 = arith.constant 0 : i32
    return %c0_i32, %c0_i32_0 : i32, i32
  }
  func.func @transform_6(%arg0: i32) -> (i32, i32) {
    %c0_i32 = arith.constant 0 : i32
    %c0_i32_0 = arith.constant 0 : i32
    return %arg0, %c0_i32 : i32, i32
  }
}

</mosaic_0001>

<bundles_post_ra>
// kernel: tpu_custom_call.1
= control target key start
LH: loop header
LB: loop body
LE: loop exit
PB: predicated region body
PF: predicated region fallthrough
CT: control target
= control target key end

     0   :  { %11 = vsyncpa [#allocation4], 0  ;;  %s2753_s0 = inlined_call_operand.hbm [shape: f32[8,8,16], index: 0, kind: input, shape index: {}]   ;;  %s2754_s1 = inlined_call_operand.hbm [shape: bf16[16,512], index: 1, kind: input, shape index: {}]   ;;  %s2755_s2 = inlined_call_operand.hbm [shape: bf16[128,512], index: 2, kind: input, shape index: {}]   ;;  %s2756_s3 = inlined_call_operand.hbm [shape: f32[1,512], index: 3, kind: input, shape index: {}]   ;;  %s2757_s4 = inlined_call_operand.hbm [shape: bf16[128,128], index: 4, kind: input, shape index: {}]   ;;  %s2758_s5 = inlined_call_operand.vmem [shape: f32[1,128], index: 5, kind: input, shape index: {}]   ;;  %s2759_s6 = inlined_call_operand.hbm [shape: f32[8,128], index: 6, kind: output, shape index: {}]  }
   0x1   :  { %12 = vsyncpa [#allocation7], 0 }
   0x2   :  { %13 = vsyncpa [#allocation10], 0  ;;  %s32_s23 = sshll.u32 %s2754_s1, 4  ;;  %s33_s23 = int_to_ptr.hbm [resolvable:$true] %s32_s23 }
   0x3   :  { %14 = vsyncpa [#allocation5], 0  ;;  %s2179_s24 = smov [#allocation6]   ;;  %s59_s28 = sshll.u32 %s2756_s3, 4  ;;  %s60_s28 = int_to_ptr.hbm [resolvable:$true] %s59_s28 }
   0x4   :  { %s34_s25 = sshll.u32 %s2179_s24, 4  ;;  %s2180_s29 = smov 256   ;;  %s35_s25 = int_to_ptr.vmem [resolvable:$true] %s34_s25 }
   0x5   :  { %s2181_s30 = smov 16   ;;  %s2182_s7 = smov [#allocation9]  }
   0x6   :  { %40 = dma.hbm_to_vmem [thread:$0]  %s33_s23, 512, %s35_s25, [#allocation7], %s2180_s29, %s2180_s29, %s2181_s30  }
   0x7   :  { %s61_s8 = sshll.u32 %s2182_s7, 4  ;;  %s19_s11 = sshll.u32 %s2753_s0, 4  ;;  %s62_s8 = int_to_ptr.vmem [resolvable:$true] %s61_s8  ;;  %s20_s11 = int_to_ptr.hbm [resolvable:$true] %s19_s11 }
   0x8   :  { %64 = dma.hbm_to_vmem [thread:$0]  %s60_s28, 64, %s62_s8, [#allocation10]  }
   0x9   :  { %s2183_s1 = smov [#allocation3]   ;;  %s45_s3 = sshll.u32 %s2755_s2, 4  ;;  %s46_s3 = int_to_ptr.hbm [resolvable:$true] %s45_s3 }
   0xa   :  { %s21_s12 = sshll.u32 %s2183_s1, 4  ;;  %s2184_s15 = smov 128   ;;  %s22_s12 = int_to_ptr.vmem [resolvable:$true] %s21_s12 }
   0xb   :  { %s2185_s16 = smov 8   ;;  %s2186_s17 = smov [#allocation8]  }
   0xc   :  { %27 = dma.hbm_to_vmem [thread:$0]  %s20_s11, 1024, %s22_s12, [#allocation4], %s2184_s15, %s2184_s15, %s2185_s16  }
   0xd   :  { %s47_s18 = sshll.u32 %s2186_s17, 4  ;;  %s69_s0 = sshll.u32 %s2757_s4, 4  ;;  %s48_s18 = int_to_ptr.vmem [resolvable:$true] %s47_s18  ;;  %s70_s0 = int_to_ptr.hbm [resolvable:$true] %s69_s0 }
   0xe   :  { %53 = dma.hbm_to_vmem [thread:$0]  %s46_s3, 4096, %s48_s18, [#allocation7], %s2180_s29, %s2180_s29, %s2181_s30  }
   0xf   :  { %s2187_s21 = smov [#allocation11]   ;;  %s2188_s23 = smov 64  }
  0x10   :  { %s71_s22 = sshll.u32 %s2187_s21, 4  ;;  %s2189_s24 = smov 4   ;;  %s72_s22 = int_to_ptr.vmem [resolvable:$true] %s71_s22 }
  0x11   :  { %77 = dma.hbm_to_vmem [thread:$0]  %s70_s0, 1024, %s72_s22, [#allocation10], %s2188_s23, %s2188_s23, %s2189_s24  }
  0x12   :  { %2171 = dma.done.wait [#allocation4], 1024  }
  0x13   :  { %2172 = vsyncadd [#allocation4], 4294966272 }
  0x14   :  { %2173 = dma.done.wait [#allocation7], 4608  }
  0x15   :  { %2174 = vsyncadd [#allocation7], 4294962688 }
  0x16   :  { %2175 = dma.done.wait [#allocation10], 1088  }
  0x17   :  { %2176 = vsyncadd [#allocation10], 4294966208  ;;  %v1626_v0 = vld [vmem:[#allocation6] sm:$0xf]  ;;  %v1842_v1 = vld [vmem:[#allocation6 + $0xc] sm:$0xf0] }
  0x18   :  { %v1634_v2 = vld [vmem:[#allocation6 + $0x8] sm:$0xf]  ;;  %v1627_v3 = vor.u32 %v1842_v1, %v1626_v0  ;;  %v1843_v4 = vld [vmem:[#allocation6 + $0x14] sm:$0xf0]  ;;  %v1841_v5 = vld [vmem:[#allocation6 + $0xc] sm:$0xf] }
  0x19   :  { %v1636_v6 = vld [vmem:[#allocation6 + $0x18] sm:$0xf0]  ;;  %v1635_v7 = vor.u32 %v1843_v4, %v1634_v2  ;;  %v101_v9 = vld [vmem:[#allocation3] sm:$0xff]  ;;  %v102_v10 = vld [vmem:[#allocation3 + $0x8] sm:$0xff]  ;;  %vm171_vm0 = vcmask 130048   ;;  %s2191_s25 = smov [#allocation12]  }
  0x1a   :  { %v1639_v8 = vor.u32 %v1841_v5, %v1636_v6  ;;  %v107_v11 = vld [vmem:[#allocation3 + $0x30] sm:$0xff]  ;;  %191 = vmatpush.bf16.msra.mxu0 %v1627_v3  ;;  %1884 = vmatpush.bf16.msra.mxu1 %v1627_v3  ;;  %v109_v12 = vpack.c.bf16 %v101_v9, %v101_v9  ;;  %v110_v13 = vpack.c.bf16 %v102_v10, %v102_v10  ;;  %v108_v14 = vld [vmem:[#allocation3 + $0x38] sm:$0xff]  ;;  %v1840_v16 = vld [vmem:[#allocation6 + $0x4] sm:$0xf]  ;;  %s1610_s26 = sshll.u32 %s2191_s25, 4  ;;  %s1612_s29 = sshll.u32 %s2759_s6, 4  ;;  %s1611_s26 = int_to_ptr.vmem [resolvable:$true] %s1610_s26  ;;  %s1613_s29 = int_to_ptr.hbm [resolvable:$true] %s1612_s29 }
  0x1b   :  { %v115_v15 = vpack.c.bf16 %v107_v11, %v107_v11  ;;  %v1628_v17 = vld [vmem:[#allocation6 + $0x10] sm:$0xf0]  ;;  %249 = vmatpush.bf16.msra.mxu2 %v1635_v7  ;;  %v116_v18 = vpack.c.bf16 %v108_v14, %v108_v14  ;;  %v1872_v20 = vld [vmem:[#allocation8 + $0xe4] sm:$0xf]  ;;  %v1770_v25 = vld [vmem:[#allocation8 + $0xe0] sm:$0xf] }
  0x1c   :  { %278 = vmatpush.bf16.msra.mxu3 %v1639_v8  ;;  %v1631_v19 = vor.u32 %v1840_v16, %v1628_v17  ;;  %v139_v21 = vunpack.c.l.b16 %v109_v12  ;;  %v140_v22 = vunpack.c.l.b16 %v110_v13  ;;  %v1772_v24 = vld [vmem:[#allocation8 + $0xf0] sm:$0xf0]  ;;  %v1874_v26 = vld [vmem:[#allocation8 + $0xec] sm:$0xf0]  ;;  %v1754_v29 = vld [vmem:[#allocation8 + $0xc0] sm:$0xf] }
  0x1d   :  { %v145_v23 = vunpack.c.l.b16 %v115_v15  ;;  %v146_v27 = vunpack.c.l.b16 %v116_v18  ;;  %v2242_v28 = vor.u32 %v1874_v26, %v1770_v25  ;;  %v1870_v30 = vld [vmem:[#allocation8 + $0xcc] sm:$0xf0]  ;;  %v1778_v31 = vld [vmem:[#allocation8 + $0xe8] sm:$0xf]  ;;  %v2246_v33 = vor.u32 %v1872_v20, %v1772_v24  ;;  %v1875_v34 = vld [vmem:[#allocation8 + $0xf4] sm:$0xf0] }
  0x1e   :  { %220 = vmatpush.bf16.msrb.mxu1 %v1631_v19  ;;  %v2244_v32 = vpack.c.b16 %v140_v22, %v139_v21  ;;  %v103_v36 = vld [vmem:[#allocation3 + $0x10] sm:$0xff]  ;;  %v2251_v37 = vor.u32 %v1870_v30, %v1754_v29  ;;  %v2253_v38 = vor.u32 %v1875_v34, %v1778_v31  ;;  %v1868_v39 = vld [vmem:[#allocation8 + $0xc4] sm:$0xf]  ;;  %v1738_v41 = vld [vmem:[#allocation8 + $0xa0] sm:$0xf] }
  0x1f   :  { %v2248_v35 = vpack.c.b16 %v146_v27, %v145_v23  ;;  %528 = vmatpush.bf16.msrb.mxu0 %v2242_v28  ;;  %v1756_v40 = vld [vmem:[#allocation8 + $0xd0] sm:$0xf0]  ;;  %v1866_v42 = vld [vmem:[#allocation8 + $0xac] sm:$0xf0]  ;;  %v1762_v43 = vld [vmem:[#allocation8 + $0xc8] sm:$0xf]  ;;  %v111_v55 = vpack.c.bf16 %v103_v36, %v103_v36 }
  0x20   :  { %1640 = vmatmul.msk.bf16.vlgmr.msra.gmra.mxu0 %vm171_vm0, %v2244_v32  ;;  %1648 = vmatmul.msk.bf16.vlgmr.msra.gmra.mxu2 %vm171_vm0, %v2244_v32  ;;  %v1871_v44 = vld [vmem:[#allocation8 + $0xd4] sm:$0xf0]  ;;  %v1873_v46 = vld [vmem:[#allocation8 + $0xec] sm:$0xf]  ;;  %v1780_v47 = vld [vmem:[#allocation8 + $0xf8] sm:$0xf0]  ;;  %v2265_v48 = vor.u32 %v1868_v39, %v1756_v40  ;;  %v2272_v51 = vor.u32 %v1866_v42, %v1738_v41 }
  0x21   :  { %1643 = vmatmul.msk.bf16.vlgmr.msra.gmra.mxu1 %vm171_vm0, %v2248_v35  ;;  %1652 = vmatmul.msk.bf16.vlgmr.msra.gmra.mxu3 %vm171_vm0, %v2244_v32  ;;  %v104_v45 = vld [vmem:[#allocation3 + $0x18] sm:$0xff]  ;;  %v2267_v49 = vor.u32 %v1871_v44, %v1762_v43  ;;  %v2269_v50 = vor.u32 %v1873_v46, %v1780_v47  ;;  %v1722_v52 = vld [vmem:[#allocation8 + $0x80] sm:$0xf]  ;;  %v1864_v53 = vld [vmem:[#allocation8 + $0xa4] sm:$0xf]  ;;  %v141_v7 = vunpack.c.l.b16 %v111_v55 }
  0x22   :  { %541 = vmatpush.bf16.msra.mxu1 %v2246_v33  ;;  %554 = vmatpush.bf16.msrb.mxu2 %v2253_v38  ;;  %v1740_v54 = vld [vmem:[#allocation8 + $0xb0] sm:$0xf0]  ;;  %v112_v56 = vpack.c.bf16 %v104_v45, %v104_v45  ;;  %v1862_v57 = vld [vmem:[#allocation8 + $0x8c] sm:$0xf0]  ;;  %v1746_v58 = vld [vmem:[#allocation8 + $0xa8] sm:$0xf] }
  0x23   :  { %529 = vmatpush.bf16.msrb.mxu0 %v2251_v37  ;;  %567 = vmatpush.bf16.msrb.mxu3 %v2269_v50  ;;  %v1867_v59 = vld [vmem:[#allocation8 + $0xb4] sm:$0xf0]  ;;  %v1869_v60 = vld [vmem:[#allocation8 + $0xcc] sm:$0xf]  ;;  %v1764_v61 = vld [vmem:[#allocation8 + $0xd8] sm:$0xf0]  ;;  %v2277_v62 = vor.u32 %v1864_v53, %v1740_v54  ;;  %v2284_v3 = vor.u32 %v1862_v57, %v1722_v52 }
  0x24   :  { %v1706_v63 = vld [vmem:[#allocation8 + $0x60] sm:$0xf]  ;;  %v2279_v0 = vor.u32 %v1867_v59, %v1746_v58  ;;  %v2281_v1 = vor.u32 %v1869_v60, %v1764_v61  ;;  %v1860_v2 = vld [vmem:[#allocation8 + $0x84] sm:$0xf]  ;;  %v1724_v4 = vld [vmem:[#allocation8 + $0x90] sm:$0xf0]  ;;  %v142_v8 = vunpack.c.l.b16 %v112_v56 }
  0x25   :  { %v1865_v5 = vld [vmem:[#allocation8 + $0xac] sm:$0xf]  ;;  %v1748_v6 = vld [vmem:[#allocation8 + $0xb8] sm:$0xf0]  ;;  %v1858_v9 = vld [vmem:[#allocation8 + $0x6c] sm:$0xf0]  ;;  %v2291_v13 = vor.u32 %v1860_v2, %v1724_v4 }
  0x26   :  { %542 = vmatpush.bf16.msra.mxu1 %v2265_v48  ;;  %555 = vmatpush.bf16.msrb.mxu2 %v2267_v49  ;;  %v2287_v10 = vor.u32 %v1865_v5, %v1748_v6  ;;  %v1730_v11 = vld [vmem:[#allocation8 + $0x88] sm:$0xf]  ;;  %v1863_v12 = vld [vmem:[#allocation8 + $0x94] sm:$0xf0]  ;;  %v2296_v15 = vor.u32 %v1858_v9, %v1706_v63  ;;  %v1861_v16 = vld [vmem:[#allocation8 + $0x8c] sm:$0xf]  ;;  %v2298_v18 = vpack.c.b16 %v142_v8, %v141_v7 }
  0x27   :  { %530 = vmatpush.bf16.msrb.mxu0 %v2272_v51  ;;  %568 = vmatpush.bf16.msrb.mxu3 %v2281_v1  ;;  %v2293_v14 = vor.u32 %v1863_v12, %v1730_v11  ;;  %v1732_v17 = vld [vmem:[#allocation8 + $0x98] sm:$0xf0]  ;;  %v1690_v19 = vld [vmem:[#allocation8 + $0x40] sm:$0xf]  ;;  %v1854_v20 = vld [vmem:[#allocation8 + $0x4c] sm:$0xf0] }
  0x28   :  { %v2303_v21 = vor.u32 %v1861_v16, %v1732_v17  ;;  %v105_v22 = vld [vmem:[#allocation3 + $0x20] sm:$0xff]  ;;  %v106_v23 = vld [vmem:[#allocation3 + $0x28] sm:$0xff]  ;;  %v2306_v24 = vor.u32 %v1854_v20, %v1690_v19  ;;  %v1859_v26 = vld [vmem:[#allocation8 + $0x74] sm:$0xf0] }
  0x29   :  { %v1714_v25 = vld [vmem:[#allocation8 + $0x68] sm:$0xf]  ;;  %v1857_v27 = vld [vmem:[#allocation8 + $0x6c] sm:$0xf]  ;;  %v1674_v29 = vld [vmem:[#allocation8 + $0x20] sm:$0xf]  ;;  %v113_v54 = vpack.c.bf16 %v105_v22, %v105_v22  ;;  %v114_v55 = vpack.c.bf16 %v106_v23, %v106_v23 }
  0x2a   :  { %543 = vmatpush.bf16.msra.mxu1 %v2277_v62  ;;  %556 = vmatpush.bf16.msrb.mxu2 %v2279_v0  ;;  %v1850_v30 = vld [vmem:[#allocation8 + $0x2c] sm:$0xf0]  ;;  %v2312_v31 = vor.u32 %v1859_v26, %v1714_v25  ;;  %v1716_v34 = vld [vmem:[#allocation8 + $0x78] sm:$0xf0]  ;;  %v1856_v36 = vld [vmem:[#allocation8 + $0x64] sm:$0xf] }
  0x2b   :  { %531 = vmatpush.bf16.msrb.mxu0 %v2284_v3  ;;  %569 = vmatpush.bf16.msrb.mxu3 %v2287_v10  ;;  %v1708_v39 = vld [vmem:[#allocation8 + $0x70] sm:$0xf0]  ;;  %v1698_v40 = vld [vmem:[#allocation8 + $0x48] sm:$0xf]  ;;  %v2322_v42 = vor.u32 %v1857_v27, %v1716_v34  ;;  %v1855_v43 = vld [vmem:[#allocation8 + $0x54] sm:$0xf0]  ;;  %v143_v7 = vunpack.c.l.b16 %v113_v54  ;;  %v144_v8 = vunpack.c.l.b16 %v114_v55 }
  0x2c   :  { %v2319_v41 = vor.u32 %v1856_v36, %v1708_v39  ;;  %v1853_v44 = vld [vmem:[#allocation8 + $0x4c] sm:$0xf]  ;;  %v1700_v45 = vld [vmem:[#allocation8 + $0x58] sm:$0xf0]  ;;  %v2327_v46 = vor.u32 %v1855_v43, %v1698_v40  ;;  %v1852_v47 = vld [vmem:[#allocation8 + $0x44] sm:$0xf] }
  0x2d   :  { %v1692_v52 = vld [vmem:[#allocation8 + $0x50] sm:$0xf0]  ;;  %v1682_v53 = vld [vmem:[#allocation8 + $0x28] sm:$0xf]  ;;  %v1658_v56 = vld [vmem:[#allocation8] sm:$0xf]  ;;  %v2334_v60 = vor.u32 %v1853_v44, %v1700_v45  ;;  %v149_v17 = vpack.c.b16 %v144_v8, %v143_v7 }
  0x2e   :  { %544 = vmatpush.bf16.msra.mxu1 %v2291_v13  ;;  %557 = vmatpush.bf16.msrb.mxu2 %v2293_v14  ;;  %v1846_v57 = vld [vmem:[#allocation8 + $0xc] sm:$0xf0]  ;;  %v2330_v58 = vor.u32 %v1852_v47, %v1692_v52  ;;  %v1851_v59 = vld [vmem:[#allocation8 + $0x34] sm:$0xf0]  ;;  %v1849_v63 = vld [vmem:[#allocation8 + $0x2c] sm:$0xf] }
  0x2f   :  { %532 = vmatpush.bf16.msrb.mxu0 %v2296_v15  ;;  %570 = vmatpush.bf16.msrb.mxu3 %v2303_v21  ;;  %v2336_v61 = vor.u32 %v1851_v59, %v1682_v53  ;;  %v2339_v2 = vor.u32 %v1846_v57, %v1658_v56  ;;  %v1684_v4 = vld [vmem:[#allocation8 + $0x38] sm:$0xf0]  ;;  %v1666_v5 = vld [vmem:[#allocation8 + $0x8] sm:$0xf]  ;;  %v1847_v6 = vld [vmem:[#allocation8 + $0x14] sm:$0xf0] }
  0x30   :  { %1641 = vmatmul.msk.bf16.gmra.mxu0 %vm171_vm0, %v2298_v18  ;;  %1649 = vmatmul.msk.bf16.gmra.mxu2 %vm171_vm0, %v2298_v18  ;;  %v2344_v9 = vor.u32 %v1849_v63, %v1684_v4  ;;  %v2346_v11 = vor.u32 %v1847_v6, %v1666_v5  ;;  %v1845_v12 = vld [vmem:[#allocation8 + $0xc] sm:$0xf]  ;;  %v1668_v16 = vld [vmem:[#allocation8 + $0x18] sm:$0xf0]  ;;  %v1848_v20 = vld [vmem:[#allocation8 + $0x24] sm:$0xf] }
  0x31   :  { %1644 = vmatmul.msk.bf16.vlgmr.msrb.gmra.mxu1 %vm171_vm0, %v2244_v32  ;;  %1653 = vmatmul.msk.bf16.gmra.mxu3 %vm171_vm0, %v2298_v18  ;;  %v2325_v32 = vor.u32 %v1850_v30, %v1674_v29  ;;  %v2352_v19 = vor.u32 %v1845_v12, %v1668_v16  ;;  %v1676_v22 = vld [vmem:[#allocation8 + $0x30] sm:$0xf0]  ;;  %v1844_v23 = vld [vmem:[#allocation8 + $0x4] sm:$0xf] }
  0x32   :  { %558 = vmatpush.bf16.msrb.mxu2 %v2312_v31  ;;  %545 = vmatpush.bf16.msra.mxu1 %v2319_v41  ;;  %v2361_v25 = vor.u32 %v1848_v20, %v1676_v22  ;;  %v1660_v26 = vld [vmem:[#allocation8 + $0x10] sm:$0xf0] }
  0x33   :  { %533 = vmatpush.bf16.msrb.mxu0 %v2306_v24  ;;  %571 = vmatpush.bf16.msrb.mxu3 %v2322_v42  ;;  %v2367_v27 = vor.u32 %v1844_v23, %v1660_v26 }
  0x36   :  { %559 = vmatpush.bf16.msrb.mxu2 %v2327_v46  ;;  %546 = vmatpush.bf16.msra.mxu1 %v2330_v58 }
  0x37   :  { %534 = vmatpush.bf16.msrb.mxu0 %v2325_v32  ;;  %572 = vmatpush.bf16.msrb.mxu3 %v2334_v60 }
  0x3a   :  { %560 = vmatpush.bf16.msrb.mxu2 %v2336_v61  ;;  %547 = vmatpush.bf16.msra.mxu1 %v2361_v25 }
  0x3b   :  { %535 = vmatpush.bf16.msrb.mxu0 %v2339_v2  ;;  %573 = vmatpush.bf16.msrb.mxu3 %v2344_v9 }
  0x3e   :  { %561 = vmatpush.bf16.msrb.mxu2 %v2346_v11  ;;  %548 = vmatpush.bf16.msra.mxu1 %v2367_v27 }
  0x3f   :  { %653 = vmatpush.bf16.msra.mxu0 %v2242_v28  ;;  %574 = vmatpush.bf16.msrb.mxu3 %v2352_v19 }
  0x40   :  { %1642 = vmatmul.msk.bf16.gmra.mxu0 %vm171_vm0, %v149_v17  ;;  %1650 = vmatmul.msk.bf16.gmra.mxu2 %vm171_vm0, %v149_v17 }
  0x41   :  { %1645 = vmatmul.msk.bf16.gmra.mxu1 %vm171_vm0, %v2298_v18  ;;  %1654 = vmatmul.msk.bf16.gmra.mxu3 %vm171_vm0, %v149_v17  ;;  %v2190_v18 = vmov 0  }
  0x42   :  { %679 = vmatpush.bf16.msra.mxu2 %v2253_v38  ;;  %666 = vmatpush.bf16.msrb.mxu1 %v2246_v33 }
  0x43   :  { %654 = vmatpush.bf16.msra.mxu0 %v2251_v37  ;;  %692 = vmatpush.bf16.msra.mxu3 %v2269_v50 }
  0x46   :  { %680 = vmatpush.bf16.msra.mxu2 %v2267_v49  ;;  %667 = vmatpush.bf16.msrb.mxu1 %v2265_v48 }
  0x47   :  { %655 = vmatpush.bf16.msra.mxu0 %v2272_v51  ;;  %693 = vmatpush.bf16.msra.mxu3 %v2281_v1 }
  0x4a   :  { %681 = vmatpush.bf16.msra.mxu2 %v2279_v0  ;;  %668 = vmatpush.bf16.msrb.mxu1 %v2277_v62 }
  0x4b   :  { %656 = vmatpush.bf16.msra.mxu0 %v2284_v3  ;;  %694 = vmatpush.bf16.msra.mxu3 %v2287_v10 }
  0x4e   :  { %682 = vmatpush.bf16.msra.mxu2 %v2293_v14  ;;  %669 = vmatpush.bf16.msrb.mxu1 %v2291_v13 }
  0x4f   :  { %657 = vmatpush.bf16.msra.mxu0 %v2296_v15  ;;  %695 = vmatpush.bf16.msra.mxu3 %v2303_v21 }
  0x50   :  { %1651 = vmatmul.msk.bf16.gmra.mxu2 %vm171_vm0, %v2248_v35  ;;  %536 = vmatmul.bf16.vlgmr.msrb.gmra.mxu0 %v2190_v18 }
  0x51   :  { %1646 = vmatmul.msk.bf16.gmra.mxu1 %vm171_vm0, %v149_v17  ;;  %1655 = vmatmul.msk.bf16.gmra.mxu3 %vm171_vm0, %v2248_v35 }
  0x52   :  { %683 = vmatpush.bf16.msra.mxu2 %v2312_v31  ;;  %670 = vmatpush.bf16.msrb.mxu1 %v2319_v41 }
  0x53   :  { %658 = vmatpush.bf16.msra.mxu0 %v2306_v24  ;;  %696 = vmatpush.bf16.msra.mxu3 %v2322_v42 }
  0x56   :  { %684 = vmatpush.bf16.msra.mxu2 %v2327_v46  ;;  %671 = vmatpush.bf16.msrb.mxu1 %v2330_v58 }
  0x57   :  { %659 = vmatpush.bf16.msra.mxu0 %v2325_v32  ;;  %697 = vmatpush.bf16.msra.mxu3 %v2334_v60 }
  0x5a   :  { %685 = vmatpush.bf16.msra.mxu2 %v2336_v61  ;;  %672 = vmatpush.bf16.msrb.mxu1 %v2361_v25 }
  0x5b   :  { %660 = vmatpush.bf16.msra.mxu0 %v2339_v2  ;;  %698 = vmatpush.bf16.msra.mxu3 %v2344_v9 }
  0x5e   :  { %686 = vmatpush.bf16.msra.mxu2 %v2346_v11  ;;  %673 = vmatpush.bf16.msrb.mxu1 %v2367_v27 }
  0x5f   :  { %778 = vmatpush.bf16.msrb.mxu0 %v2242_v28  ;;  %699 = vmatpush.bf16.msra.mxu3 %v2352_v19 }
  0x60   :  { %562 = vmatmul.bf16.vlgmr.msrb.gmra.mxu2 %v2190_v18 }
  0x61   :  { %1647 = vmatmul.msk.bf16.gmra.mxu1 %vm171_vm0, %v2248_v35  ;;  %575 = vmatmul.bf16.vlgmr.msrb.gmra.mxu3 %v2190_v18  ;;  %v121_v35 = vld [vmem:[#allocation9] sm:$0xf] }
  0x62   :  { %804 = vmatpush.bf16.msrb.mxu2 %v2253_v38  ;;  %v2436_v29 = vperm.slane %v121_v35, 0  ;;  %v2450_v47 = vperm.slane %v121_v35, 2  ;;  %v126_v52 = vperm.slane %v121_v35, 3  ;;  %v2465_v7 = vperm.slane %v121_v35, 1 }
  0x63   :  { %779 = vmatpush.bf16.msrb.mxu0 %v2251_v37  ;;  %817 = vmatpush.bf16.msrb.mxu3 %v2269_v50 }
  0x64   :  { %2761 = vst [vmem:[#allocation17_spill] sm:$0xff] %v2436_v29 }
  0x66   :  { %805 = vmatpush.bf16.msrb.mxu2 %v2267_v49 }
  0x67   :  { %780 = vmatpush.bf16.msrb.mxu0 %v2272_v51  ;;  %818 = vmatpush.bf16.msrb.mxu3 %v2281_v1 }
  0x6a   :  { %806 = vmatpush.bf16.msrb.mxu2 %v2279_v0 }
  0x6b   :  { %781 = vmatpush.bf16.msrb.mxu0 %v2284_v3  ;;  %819 = vmatpush.bf16.msrb.mxu3 %v2287_v10 }
  0x6e   :  { %807 = vmatpush.bf16.msrb.mxu2 %v2293_v14 }
  0x6f   :  { %782 = vmatpush.bf16.msrb.mxu0 %v2296_v15  ;;  %820 = vmatpush.bf16.msrb.mxu3 %v2303_v21 }
  0x71   :  { %549 = vmatmul.bf16.vlgmr.msra.gmra.mxu1 %v2190_v18 }
  0x72   :  { %791 = vmatpush.bf16.msra.mxu1 %v2246_v33  ;;  %808 = vmatpush.bf16.msrb.mxu2 %v2312_v31 }
  0x73   :  { %783 = vmatpush.bf16.msrb.mxu0 %v2306_v24  ;;  %821 = vmatpush.bf16.msrb.mxu3 %v2322_v42 }
  0x76   :  { %792 = vmatpush.bf16.msra.mxu1 %v2265_v48  ;;  %809 = vmatpush.bf16.msrb.mxu2 %v2327_v46 }
  0x77   :  { %784 = vmatpush.bf16.msrb.mxu0 %v2325_v32  ;;  %822 = vmatpush.bf16.msrb.mxu3 %v2334_v60 }
  0x7a   :  { %793 = vmatpush.bf16.msra.mxu1 %v2277_v62  ;;  %810 = vmatpush.bf16.msrb.mxu2 %v2336_v61 }
  0x7b   :  { %785 = vmatpush.bf16.msrb.mxu0 %v2339_v2  ;;  %823 = vmatpush.bf16.msrb.mxu3 %v2344_v9 }
  0x7e   :  { %794 = vmatpush.bf16.msra.mxu1 %v2291_v13  ;;  %811 = vmatpush.bf16.msrb.mxu2 %v2346_v11 }
  0x7f   :  { %824 = vmatpush.bf16.msrb.mxu3 %v2352_v19 }
  0x82   :  { %795 = vmatpush.bf16.msra.mxu1 %v2319_v41 }
  0x86   :  { %796 = vmatpush.bf16.msra.mxu1 %v2330_v58 }
  0x8a   :  { %797 = vmatpush.bf16.msra.mxu1 %v2361_v25 }
  0x8e   :  { %798 = vmatpush.bf16.msra.mxu1 %v2367_v27 }
  0x9d   :  { %v193_v30 = vpop.f32.mrf.mxu0 }
  0x9e   :  { %v208_v34 = vpop.f32.mrf.mxu1 }
  0x9f   :  { %v2439_v36 = vadd.f32 %v208_v34, %v2436_v29 }
  0xa1   :  { %2762 = vst [vmem:[#allocation18_spill] sm:$0xff] %v2439_v36 }
  0xa3   :  { %v2441_v39 = vpop.f32.mrf.mxu2 }
  0xa4   :  { %v2443_v40 = vpop.f32.mrf.mxu3 }
  0xa5   :  { %v195_v43 = vpop.f32.mrf.mxu0 }
  0xa6   :  { %v2446_v44 = vadd.f32 %v195_v43, %v2436_v29  ;;  %v2448_v45 = vpop.f32.mrf.mxu1 }
  0xa7   :  { %2763 = vst [vmem:[#allocation19_spill] sm:$0xff] %v2448_v45  ;;  %v194_v45 = vadd.f32 %v193_v30, %v2436_v29 }
  0xab   :  { %v253_v53 = vpop.f32.mrf.mxu2 }
  0xac   :  { %v2453_v54 = vadd.f32 %v253_v53, %v2450_v47  ;;  %v282_v55 = vpop.f32.mrf.mxu3 }
  0xad   :  { %v2455_v56 = vadd.f32 %v282_v55, %v126_v52  ;;  %v198_v57 = vpop.f32.mrf.mxu0 }
  0xae   :  { %v2458_v59 = vadd.f32 %v198_v57, %v2436_v29  ;;  %v2460_v63 = vpop.f32.mrf.mxu1 }
  0xb3   :  { %v256_v4 = vpop.f32.mrf.mxu2 }
  0xb4   :  { %v2463_v5 = vadd.f32 %v256_v4, %v2450_v47  ;;  %v285_v6 = vpop.f32.mrf.mxu3 }
  0xb5   :  { %v2467_v8 = vadd.f32 %v285_v6, %v126_v52  ;;  %v200_v12 = vpop.f32.mrf.mxu0 }
  0xb6   :  { %v2470_v16 = vadd.f32 %v200_v12, %v2436_v29  ;;  %v224_v17 = vpop.f32.mrf.mxu1 }
  0xb7   :  { %v2473_v20 = vadd.f32 %v224_v17, %v2465_v7 }
  0xbb   :  { %v258_v22 = vpop.f32.mrf.mxu2 }
  0xbc   :  { %v2476_v23 = vadd.f32 %v258_v22, %v2450_v47  ;;  %v287_v26 = vpop.f32.mrf.mxu3 }
  0xbd   :  { %v2478_v18 = vadd.f32 %v287_v26, %v126_v52  ;;  %v203_v34 = vpop.f32.mrf.mxu0 }
  0xbe   :  { %2764 = vst [vmem:[#allocation20_spill] sm:$0xff] %v2476_v23  ;;  %v2481_v35 = vadd.f32 %v203_v34, %v2436_v29  ;;  %v227_v43 = vpop.f32.mrf.mxu1 }
  0xbf   :  { %2765 = vst [vmem:[#allocation21_spill] sm:$0xff] %v2478_v18  ;;  %v2484_v53 = vadd.f32 %v227_v43, %v2465_v7 }
  0xc0   :  { %2766 = vst [vmem:[#allocation22_spill] sm:$0xff] %v2481_v35 }
  0xc3   :  { %v261_v55 = vpop.f32.mrf.mxu2 }
  0xc4   :  { %v2487_v57 = vadd.f32 %v261_v55, %v2450_v47  ;;  %v290_v4 = vpop.f32.mrf.mxu3 }
  0xc5   :  { %v2489_v6 = vadd.f32 %v290_v4, %v126_v52  ;;  %v205_v12 = vpop.f32.mrf.mxu0 }
  0xc6   :  { %2767 = vst [vmem:[#allocation23_spill] sm:$0xff] %v2487_v57  ;;  %v2492_v17 = vadd.f32 %v205_v12, %v2436_v29  ;;  %v229_v22 = vpop.f32.mrf.mxu1 }
  0xc7   :  { %2768 = vst [vmem:[#allocation24_spill] sm:$0xff] %v2489_v6  ;;  %v2495_v26 = vadd.f32 %v229_v22, %v2465_v7 }
  0xc8   :  { %2769 = vst [vmem:[#allocation25_spill] sm:$0xff] %v2492_v17 }
  0xc9   :  { %2770 = vst [vmem:[#allocation26_spill] sm:$0xff] %v2495_v26 }
  0xcb   :  { %v263_v34 = vpop.f32.mrf.mxu2 }
  0xcc   :  { %v2499_v43 = vadd.f32 %v263_v34, %v2450_v47  ;;  %v292_v36 = vpop.f32.mrf.mxu3 }
  0xcd   :  { %v2501_v55 = vadd.f32 %v292_v36, %v126_v52  ;;  %v537_v57 = vpop.f32.mrf.mxu0 }
  0xce   :  { %2771 = vst [vmem:[#allocation27_spill] sm:$0xff] %v2499_v43  ;;  %v232_v4 = vpop.f32.mrf.mxu1  ;;  %v580_v6 = vadd.f32 %v537_v57, %v194_v45 }
  0xcf   :  { %2772 = vst [vmem:[#allocation28_spill] sm:$0xff] %v2501_v55  ;;  %v2504_v35 = vadd.f32 %v232_v4, %v2465_v7 }
  0xd0   :  { %v1784_v12 = vmul.f32 -1.442695, %v580_v6 }
  0xd1   :  { %2773 = vst [vmem:[#allocation29_spill] sm:$0xff] %v2504_v35 }
  0xd2   :  { %1899 = vpow2.f32 %v1784_v12 }
  0xd3   :  { %v266_v17 = vpop.f32.mrf.mxu2 }
  0xd4   :  { %v2507_v22 = vadd.f32 %v266_v17, %v2450_v47  ;;  %v295_v18 = vpop.f32.mrf.mxu3 }
  0xd5   :  { %v2509_v30 = vadd.f32 %v295_v18, %v126_v52  ;;  %v539_v34 = vpop.f32.mrf.mxu0 }
  0xd6   :  { %2774 = vst [vmem:[#allocation30_spill] sm:$0xff] %v2507_v22  ;;  %v234_v29 = vpop.f32.mrf.mxu1 }
  0xd7   :  { %2775 = vst [vmem:[#allocation31_spill] sm:$0xff] %v2509_v30  ;;  %v2512_v36 = vadd.f32 %v234_v29, %v2465_v7  ;;  %v281_v30 = vadd.f32 %v2443_v40, %v126_v52 }
  0xd8   :  { %v1900_v55 = vpop.eup %1899 }
  0xd9   :  { %2776 = vst [vmem:[#allocation32_spill] sm:$0xff] %v2512_v36  ;;  %v590_v43 = vadd.f32 1.0, %v1900_v55  ;;  %v252_v55 = vadd.f32 %v2441_v39, %v2450_v47 }
  0xdb   :  { %1901 = vrcp.f32 %v590_v43  ;;  %v268_v45 = vpop.f32.mrf.mxu2  ;;  %vm597_vm2 = vweird.f32 %v590_v43 }
  0xdc   :  { %v2515_v57 = vadd.f32 %v268_v45, %v2450_v47  ;;  %v297_v6 = vpop.f32.mrf.mxu3  ;;  %v603_v45 = vand.u32 2147483648, %v590_v43 }
  0xdd   :  { %v2517_v4 = vadd.f32 %v297_v6, %v126_v52  ;;  %v601_v6 = vand.u32 2147483647, %v590_v43 }
  0xde   :  { %2777 = vst [vmem:[#allocation33_spill] sm:$0xff] %v2515_v57  ;;  %v237_v17 = vpop.f32.mrf.mxu1  ;;  %v604_v40 = vor.u32 1.1754944e-38, %v603_v45 }
  0xdf   :  { %2778 = vst [vmem:[#allocation34_spill] sm:$0xff] %v2517_v4  ;;  %v2520_v12 = vadd.f32 %v237_v17, %v2465_v7  ;;  %vm602_vm4 = vcmp.eq.f32.partialorder %v601_v6, 8.507059e+37 }
  0xe1   :  { %2779 = vst [vmem:[#allocation35_spill] sm:$0xff] %v2520_v12  ;;  %v1902_v18 = vpop.eup %1901 }
  0xe2   :  { %v593_v34 = vmul.f32 %v1902_v18, %v590_v43  ;;  %vm598_vm1 = vweird.f32 %v1902_v18 }
  0xe3   :  { %v563_v29 = vpop.f32.mrf.mxu2  ;;  %vm599_vm3 = vmor %vm597_vm2, %vm598_vm1 }
  0xe4   :  { %v594_v22 = vsub.f32 1.0, %v593_v34  ;;  %v576_v36 = vpop.f32.mrf.mxu3  ;;  %v582_v57 = vadd.f32 %v563_v29, %v252_v55 }
  0xe5   :  { %v583_v35 = vadd.f32 %v576_v36, %v281_v30 }
  0xe6   :  { %v595_v23 = vmul.f32 %v1902_v18, %v594_v22  ;;  %v239_v4 = vpop.f32.mrf.mxu1  ;;  %v1786_v52 = vmul.f32 -1.442695, %v582_v57  ;;  %v223_v22 = vadd.f32 %v2460_v63, %v2465_v7 }
  0xe7   :  { %1903 = vtanh.f32 %v583_v35  ;;  %v2526_v17 = vadd.f32 %v239_v4, %v2465_v7 }
  0xe8   :  { %v596_v12 = vadd.f32 %v1902_v18, %v595_v23  ;;  %1905 = vpow2.f32 %v1786_v52 }
  0xea   :  { %v600_v26 = vsel %vm599_vm3, %v1902_v18, %v596_v12 }
  0xeb   :  { %v605_v39 = vsel %vm602_vm4, %v604_v40, %v600_v26  ;;  %v565_v47 = vpop.f32.mrf.mxu2 }
  0xec   :  { %v578_v30 = vpop.f32.mrf.mxu3 }
  0xed   :  { %v1904_v36 = vpop.eup %1903 }
  0xee   :  { %v624_v34 = vmul.f32 %v1904_v36, %v605_v39  ;;  %v550_v35 = vpop.f32.mrf.mxu1  ;;  %v1906_v23 = vpop.eup %1905 }
  0xef   :  { %v581_v29 = vadd.f32 %v550_v35, %v223_v22  ;;  %v629_v55 = vadd.f32 1.0, %v1906_v23 }
  0xf1   :  { %v1785_v4 = vmul.f32 -1.442695, %v581_v29  ;;  %vm635_vm10 = vweird.f32 %v629_v55 }
  0xf3   :  { %1907 = vpow2.f32 %v1785_v4 }
  0xf4   :  { %1909 = vrcp.f32 %v629_v55 }
  0xf6   :  { %v552_v43 = vpop.f32.mrf.mxu1 }
  0xf7   :  { %v641_v43 = vand.u32 2147483648, %v629_v55 }
  0xf9   :  { %v1908_v45 = vpop.eup %1907 }
  0xfa   :  { %v591_v57 = vadd.f32 1.0, %v1908_v45  ;;  %v1910_v26 = vpop.eup %1909  ;;  %v639_v45 = vand.u32 2147483647, %v629_v55 }
  0xfb   :  { %v631_v6 = vmul.f32 %v1910_v26, %v629_v55  ;;  %vm636_vm9 = vweird.f32 %v1910_v26 }
  0xfc   :  { %1911 = vrcp.f32 %v591_v57  ;;  %v618_v47 = vand.u32 2147483648, %v591_v57  ;;  %v616_v7 = vand.u32 2147483647, %v591_v57  ;;  %vm612_vm6 = vweird.f32 %v591_v57  ;;  %vm637_vm11 = vmor %vm635_vm10, %vm636_vm9 }
  0xfd   :  { %v632_v52 = vsub.f32 1.0, %v631_v6  ;;  %v642_v6 = vor.u32 1.1754944e-38, %v641_v43  ;;  %vm640_vm12 = vcmp.eq.f32.partialorder %v639_v45, 8.507059e+37 }
  0xfe   :  { %v619_v30 = vor.u32 1.1754944e-38, %v618_v47  ;;  %vm617_vm8 = vcmp.eq.f32.partialorder %v616_v7, 8.507059e+37 }
  0xff   :  { %v633_v35 = vmul.f32 %v1910_v26, %v632_v52 }
 0x101   :  { %v634_v23 = vadd.f32 %v1910_v26, %v633_v35 }
 0x102   :  { %v1912_v12 = vpop.eup %1911 }
 0x103   :  { %v608_v18 = vmul.f32 %v1912_v12, %v591_v57  ;;  %vm613_vm5 = vweird.f32 %v1912_v12 }
 0x104   :  { %vm614_vm7 = vmor %vm612_vm6, %vm613_vm5 }
 0x105   :  { %v609_v40 = vsub.f32 1.0, %v608_v18  ;;  %v638_v18 = vsel %vm637_vm11, %v1910_v26, %v634_v23 }
 0x107   :  { %v610_v63 = vmul.f32 %v1912_v12, %v609_v40  ;;  %v643_v40 = vsel %vm640_vm12, %v642_v6, %v638_v18 }
 0x109   :  { %v611_v39 = vadd.f32 %v1912_v12, %v610_v63 }
 0x10b   :  { %v615_v36 = vsel %vm614_vm7, %v1912_v12, %v611_v39 }
 0x10c   :  { %v620_v22 = vsel %vm617_vm8, %v619_v30, %v615_v36 }
 0x10d   :  { %v623_v29 = vmul.f32 0.0, %v620_v22 }
 0x10f   :  { %v2530_v4 = vadd.f32 %v624_v34, %v623_v29 }
 0x111   :  { %1913 = vtanh.f32 %v2530_v4 }
 0x117   :  { %v1914_v57 = vpop.eup %1913 }
 0x118   :  { %v646_v12 = vmul.f32 %v1914_v57, %v643_v40 }
 0x11a   :  { %v652_v47 = vpack.c.bf16 %v646_v12, %v646_v12 }
 0x11c   :  { %661 = vmatmul.bf16.vlgmr.msra.gmra.mxu0 %v652_v47  ;;  %674 = vmatmul.bf16.vlgmr.msrb.gmra.mxu1 %v652_v47 }
 0x11d   :  { %687 = vmatmul.bf16.vlgmr.msra.gmra.mxu2 %v652_v47  ;;  %700 = vmatmul.bf16.vlgmr.msra.gmra.mxu3 %v652_v47 }
 0x11e   :  { %903 = vmatpush.bf16.msra.mxu0 %v2242_v28  ;;  %916 = vmatpush.bf16.msrb.mxu1 %v2246_v33 }
 0x11f   :  { %929 = vmatpush.bf16.msra.mxu2 %v2253_v38  ;;  %942 = vmatpush.bf16.msra.mxu3 %v2269_v50 }
 0x122   :  { %904 = vmatpush.bf16.msra.mxu0 %v2251_v37  ;;  %917 = vmatpush.bf16.msrb.mxu1 %v2265_v48 }
 0x123   :  { %930 = vmatpush.bf16.msra.mxu2 %v2267_v49  ;;  %943 = vmatpush.bf16.msra.mxu3 %v2281_v1 }
 0x126   :  { %905 = vmatpush.bf16.msra.mxu0 %v2272_v51  ;;  %918 = vmatpush.bf16.msrb.mxu1 %v2277_v62 }
 0x127   :  { %931 = vmatpush.bf16.msra.mxu2 %v2279_v0  ;;  %944 = vmatpush.bf16.msra.mxu3 %v2287_v10 }
 0x12a   :  { %906 = vmatpush.bf16.msra.mxu0 %v2284_v3  ;;  %919 = vmatpush.bf16.msrb.mxu1 %v2291_v13 }
 0x12b   :  { %932 = vmatpush.bf16.msra.mxu2 %v2293_v14  ;;  %945 = vmatpush.bf16.msra.mxu3 %v2303_v21 }
 0x12e   :  { %907 = vmatpush.bf16.msra.mxu0 %v2296_v15  ;;  %920 = vmatpush.bf16.msrb.mxu1 %v2319_v41 }
 0x12f   :  { %933 = vmatpush.bf16.msra.mxu2 %v2312_v31  ;;  %946 = vmatpush.bf16.msra.mxu3 %v2322_v42 }
 0x132   :  { %908 = vmatpush.bf16.msra.mxu0 %v2306_v24  ;;  %921 = vmatpush.bf16.msrb.mxu1 %v2330_v58 }
 0x133   :  { %934 = vmatpush.bf16.msra.mxu2 %v2327_v46  ;;  %947 = vmatpush.bf16.msra.mxu3 %v2334_v60 }
 0x136   :  { %909 = vmatpush.bf16.msra.mxu0 %v2325_v32  ;;  %922 = vmatpush.bf16.msrb.mxu1 %v2361_v25 }
 0x137   :  { %935 = vmatpush.bf16.msra.mxu2 %v2336_v61  ;;  %948 = vmatpush.bf16.msra.mxu3 %v2344_v9 }
 0x13a   :  { %910 = vmatpush.bf16.msra.mxu0 %v2339_v2  ;;  %923 = vmatpush.bf16.msrb.mxu1 %v2367_v27 }
 0x13b   :  { %936 = vmatpush.bf16.msra.mxu2 %v2346_v11  ;;  %949 = vmatpush.bf16.msra.mxu3 %v2352_v19 }
 0x199   :  { %v662_v34 = vpop.f32.mrf.mxu0  ;;  %v675_v55 = vpop.f32.mrf.mxu1 }
 0x19a   :  { %v705_v26 = vadd.f32 %v662_v34, %v2446_v44  ;;  %v706_v63 = vadd.f32 %v675_v55, %v2473_v20 }
 0x19c   :  { %v1787_v7 = vmul.f32 -1.442695, %v705_v26  ;;  %v1788_v52 = vmul.f32 -1.442695, %v706_v63 }
 0x19e   :  { %1915 = vpow2.f32 %v1787_v7 }
 0x19f   :  { %1917 = vpow2.f32 %v1788_v52 }
 0x1a0   :  { %v688_v39 = vpop.f32.mrf.mxu2  ;;  %v701_v30 = vpop.f32.mrf.mxu3 }
 0x1a1   :  { %v707_v36 = vadd.f32 %v688_v39, %v2453_v54  ;;  %v664_v22 = vpop.f32.mrf.mxu0  ;;  %v677_v35 = vpop.f32.mrf.mxu1  ;;  %v708_v12 = vadd.f32 %v701_v30, %v2455_v56 }
 0x1a3   :  { %v1789_v29 = vmul.f32 -1.442695, %v707_v36 }
 0x1a4   :  { %v1916_v23 = vpop.eup %1915 }
 0x1a5   :  { %v1918_v43 = vpop.eup %1917  ;;  %v715_v45 = vadd.f32 1.0, %v1916_v23  ;;  %1919 = vpow2.f32 %v1789_v29 }
 0x1a6   :  { %v716_v18 = vadd.f32 1.0, %v1918_v43 }
 0x1a7   :  { %1921 = vrcp.f32 %v715_v45  ;;  %v728_v63 = vand.u32 2147483648, %v715_v45  ;;  %v726_v39 = vand.u32 2147483647, %v715_v45  ;;  %vm722_vm15 = vweird.f32 %v715_v45 }
 0x1a8   :  { %1923 = vrcp.f32 %v716_v18  ;;  %v690_v44 = vpop.f32.mrf.mxu2  ;;  %v703_v20 = vpop.f32.mrf.mxu3  ;;  %v743_v7 = vand.u32 2147483648, %v716_v18  ;;  %v741_v22 = vand.u32 2147483647, %v716_v18  ;;  %vm737_vm0 = vweird.f32 %v716_v18 }
 0x1a9   :  { %v729_v30 = vor.u32 1.1754944e-38, %v728_v63  ;;  %vm727_vm3 = vcmp.eq.f32.partialorder %v726_v39, 8.507059e+37 }
 0x1aa   :  { %v744_v43 = vor.u32 1.1754944e-38, %v743_v7  ;;  %vm742_vm4 = vcmp.eq.f32.partialorder %v741_v22, 8.507059e+37 }
 0x1ab   :  { %v1920_v6 = vpop.eup %1919 }
 0x1ac   :  { %v754_v57 = vadd.f32 1.0, %v1920_v6 }
 0x1ad   :  { %v1922_v40 = vpop.eup %1921 }
 0x1ae   :  { %v1924_v47 = vpop.eup %1923  ;;  %v718_v34 = vmul.f32 %v1922_v40, %v715_v45  ;;  %1925 = vrcp.f32 %v754_v57  ;;  %vm723_vm13 = vweird.f32 %v1922_v40  ;;  %v766_v63 = vand.u32 2147483648, %v754_v57 }
 0x1af   :  { %v733_v54 = vmul.f32 %v1924_v47, %v716_v18  ;;  %1927 = vtanh.f32 %v708_v12  ;;  %vm738_vm14 = vweird.f32 %v1924_v47  ;;  %vm724_vm1 = vmor %vm722_vm15, %vm723_vm13  ;;  %vm760_vm6 = vweird.f32 %v754_v57 }
 0x1b0   :  { %v719_v55 = vsub.f32 1.0, %v718_v34  ;;  %vm739_vm2 = vmor %vm737_vm0, %vm738_vm14  ;;  %v767_v39 = vor.u32 1.1754944e-38, %v766_v63 }
 0x1b1   :  { %v734_v26 = vsub.f32 1.0, %v733_v54 }
 0x1b2   :  { %v720_v52 = vmul.f32 %v1922_v40, %v719_v55 }
 0x1b3   :  { %v735_v36 = vmul.f32 %v1924_v47, %v734_v26 }
 0x1b4   :  { %v1926_v35 = vpop.eup %1925  ;;  %v721_v29 = vadd.f32 %v1922_v40, %v720_v52 }
 0x1b5   :  { %v756_v56 = vmul.f32 %v1926_v35, %v754_v57  ;;  %v736_v23 = vadd.f32 %v1924_v47, %v735_v36  ;;  %v1928_v20 = vpop.eup %1927  ;;  %vm761_vm5 = vweird.f32 %v1926_v35 }
 0x1b6   :  { %v725_v44 = vsel %vm724_vm1, %v1922_v40, %v721_v29  ;;  %v764_v40 = vand.u32 2147483647, %v754_v57  ;;  %vm762_vm7 = vmor %vm760_vm6, %vm761_vm5 }
 0x1b7   :  { %v757_v6 = vsub.f32 1.0, %v756_v56  ;;  %v730_v12 = vsel %vm727_vm3, %v729_v30, %v725_v44  ;;  %v740_v34 = vsel %vm739_vm2, %v1924_v47, %v736_v23 }
 0x1b8   :  { %v745_v54 = vsel %vm742_vm4, %v744_v43, %v740_v34  ;;  %v749_v55 = vmul.f32 %v1928_v20, %v730_v12  ;;  %vm765_vm8 = vcmp.eq.f32.partialorder %v764_v40, 8.507059e+37 }
 0x1b9   :  { %v748_v26 = vmul.f32 %v745_v54, %v2530_v4  ;;  %v758_v52 = vmul.f32 %v1926_v35, %v757_v6 }
 0x1bb   :  { %v2570_v45 = vadd.f32 %v749_v55, %v748_v26  ;;  %v759_v18 = vadd.f32 %v1926_v35, %v758_v52 }
 0x1bd   :  { %1929 = vtanh.f32 %v2570_v45  ;;  %v763_v7 = vsel %vm762_vm7, %v1926_v35, %v759_v18 }
 0x1be   :  { %v768_v36 = vsel %vm765_vm8, %v767_v39, %v763_v7 }
 0x1c3   :  { %v1930_v47 = vpop.eup %1929 }
 0x1c4   :  { %v771_v22 = vmul.f32 %v1930_v47, %v768_v36 }
 0x1c6   :  { %v777_v29 = vpack.c.bf16 %v771_v22, %v771_v22 }
 0x1c8   :  { %786 = vmatmul.bf16.vlgmr.msrb.gmra.mxu0 %v777_v29  ;;  %799 = vmatmul.bf16.vlgmr.msra.gmra.mxu1 %v777_v29 }
 0x1c9   :  { %812 = vmatmul.bf16.vlgmr.msrb.gmra.mxu2 %v777_v29  ;;  %825 = vmatmul.bf16.vlgmr.msrb.gmra.mxu3 %v777_v29 }
 0x1ca   :  { %1028 = vmatpush.bf16.msrb.mxu0 %v2242_v28  ;;  %1041 = vmatpush.bf16.msra.mxu1 %v2246_v33 }
 0x1cb   :  { %1054 = vmatpush.bf16.msrb.mxu2 %v2253_v38  ;;  %1067 = vmatpush.bf16.msrb.mxu3 %v2269_v50 }
 0x1ce   :  { %1029 = vmatpush.bf16.msrb.mxu0 %v2251_v37  ;;  %1042 = vmatpush.bf16.msra.mxu1 %v2265_v48 }
 0x1cf   :  { %1055 = vmatpush.bf16.msrb.mxu2 %v2267_v49  ;;  %1068 = vmatpush.bf16.msrb.mxu3 %v2281_v1 }
 0x1d2   :  { %1030 = vmatpush.bf16.msrb.mxu0 %v2272_v51  ;;  %1043 = vmatpush.bf16.msra.mxu1 %v2277_v62 }
 0x1d3   :  { %1056 = vmatpush.bf16.msrb.mxu2 %v2279_v0  ;;  %1069 = vmatpush.bf16.msrb.mxu3 %v2287_v10 }
 0x1d6   :  { %1031 = vmatpush.bf16.msrb.mxu0 %v2284_v3  ;;  %1044 = vmatpush.bf16.msra.mxu1 %v2291_v13 }
 0x1d7   :  { %1057 = vmatpush.bf16.msrb.mxu2 %v2293_v14  ;;  %1070 = vmatpush.bf16.msrb.mxu3 %v2303_v21 }
 0x1da   :  { %1032 = vmatpush.bf16.msrb.mxu0 %v2296_v15  ;;  %1045 = vmatpush.bf16.msra.mxu1 %v2319_v41 }
 0x1db   :  { %1058 = vmatpush.bf16.msrb.mxu2 %v2312_v31  ;;  %1071 = vmatpush.bf16.msrb.mxu3 %v2322_v42 }
 0x1de   :  { %1033 = vmatpush.bf16.msrb.mxu0 %v2306_v24  ;;  %1046 = vmatpush.bf16.msra.mxu1 %v2330_v58 }
 0x1df   :  { %1059 = vmatpush.bf16.msrb.mxu2 %v2327_v46  ;;  %1072 = vmatpush.bf16.msrb.mxu3 %v2334_v60 }
 0x1e2   :  { %1034 = vmatpush.bf16.msrb.mxu0 %v2325_v32  ;;  %1047 = vmatpush.bf16.msra.mxu1 %v2361_v25 }
 0x1e3   :  { %1060 = vmatpush.bf16.msrb.mxu2 %v2336_v61  ;;  %1073 = vmatpush.bf16.msrb.mxu3 %v2344_v9 }
 0x1e6   :  { %1035 = vmatpush.bf16.msrb.mxu0 %v2339_v2  ;;  %1048 = vmatpush.bf16.msra.mxu1 %v2367_v27 }
 0x1e7   :  { %1061 = vmatpush.bf16.msrb.mxu2 %v2346_v11  ;;  %1074 = vmatpush.bf16.msrb.mxu3 %v2352_v19 }
 0x245   :  { %v787_v4 = vpop.f32.mrf.mxu0  ;;  %v800_v57 = vpop.f32.mrf.mxu1 }
 0x246   :  { %v830_v35 = vadd.f32 %v787_v4, %v2458_v59  ;;  %v831_v56 = vadd.f32 %v800_v57, %v2484_v53 }
 0x248   :  { %v1790_v30 = vmul.f32 -1.442695, %v830_v35  ;;  %v1791_v23 = vmul.f32 -1.442695, %v831_v56 }
 0x24a   :  { %1931 = vpow2.f32 %v1790_v30 }
 0x24b   :  { %1933 = vpow2.f32 %v1791_v23 }
 0x24c   :  { %v813_v43 = vpop.f32.mrf.mxu2  ;;  %v826_v44 = vpop.f32.mrf.mxu3 }
 0x24d   :  { %v832_v20 = vadd.f32 %v813_v43, %v2463_v5  ;;  %v789_v6 = vpop.f32.mrf.mxu0  ;;  %v802_v12 = vpop.f32.mrf.mxu1  ;;  %v833_v7 = vadd.f32 %v826_v44, %v2467_v8 }
 0x24f   :  { %v1792_v34 = vmul.f32 -1.442695, %v832_v20 }
 0x250   :  { %v1932_v54 = vpop.eup %1931 }
 0x251   :  { %v1934_v55 = vpop.eup %1933  ;;  %v840_v26 = vadd.f32 1.0, %v1932_v54  ;;  %1935 = vpow2.f32 %v1792_v34 }
 0x252   :  { %v841_v52 = vadd.f32 1.0, %v1934_v55 }
 0x253   :  { %1937 = vrcp.f32 %v840_v26  ;;  %v853_v29 = vand.u32 2147483648, %v840_v26  ;;  %v851_v35 = vand.u32 2147483647, %v840_v26  ;;  %vm847_vm11 = vweird.f32 %v840_v26 }
 0x254   :  { %1939 = vrcp.f32 %v841_v52  ;;  %v815_v59 = vpop.f32.mrf.mxu2  ;;  %v828_v53 = vpop.f32.mrf.mxu3  ;;  %v868_v4 = vand.u32 2147483648, %v841_v52  ;;  %v866_v30 = vand.u32 2147483647, %v841_v52  ;;  %vm862_vm12 = vweird.f32 %v841_v52 }
 0x255   :  { %v854_v44 = vor.u32 1.1754944e-38, %v853_v29  ;;  %vm852_vm15 = vcmp.eq.f32.partialorder %v851_v35, 8.507059e+37 }
 0x256   :  { %v869_v6 = vor.u32 1.1754944e-38, %v868_v4  ;;  %vm867_vm0 = vcmp.eq.f32.partialorder %v866_v30, 8.507059e+37 }
 0x257   :  { %v1936_v18 = vpop.eup %1935 }
 0x258   :  { %v879_v63 = vadd.f32 1.0, %v1936_v18 }
 0x259   :  { %v1938_v40 = vpop.eup %1937 }
 0x25a   :  { %v1940_v39 = vpop.eup %1939  ;;  %v843_v47 = vmul.f32 %v1938_v40, %v840_v26  ;;  %1941 = vrcp.f32 %v879_v63  ;;  %vm848_vm9 = vweird.f32 %v1938_v40  ;;  %vm885_vm2 = vweird.f32 %v879_v63 }
 0x25b   :  { %v858_v5 = vmul.f32 %v1940_v39, %v841_v52  ;;  %1943 = vtanh.f32 %v833_v7  ;;  %vm863_vm10 = vweird.f32 %v1940_v39  ;;  %vm849_vm13 = vmor %vm847_vm11, %vm848_vm9 }
 0x25c   :  { %v844_v36 = vsub.f32 1.0, %v843_v47  ;;  %vm864_vm14 = vmor %vm862_vm12, %vm863_vm10 }
 0x25d   :  { %v859_v22 = vsub.f32 1.0, %v858_v5  ;;  %v891_v5 = vand.u32 2147483648, %v879_v63 }
 0x25e   :  { %v845_v57 = vmul.f32 %v1938_v40, %v844_v36 }
 0x25f   :  { %v860_v56 = vmul.f32 %v1940_v39, %v859_v22  ;;  %v892_v22 = vor.u32 1.1754944e-38, %v891_v5 }
 0x260   :  { %v1942_v23 = vpop.eup %1941  ;;  %v846_v43 = vadd.f32 %v1938_v40, %v845_v57 }
 0x261   :  { %v881_v8 = vmul.f32 %v1942_v23, %v879_v63  ;;  %v861_v20 = vadd.f32 %v1940_v39, %v860_v56  ;;  %v1944_v34 = vpop.eup %1943  ;;  %vm886_vm1 = vweird.f32 %v1942_v23  ;;  %v2780_v56 = vld [vmem:[#allocation26_spill] sm:$0xff] }
 0x262   :  { %v850_v12 = vsel %vm849_vm13, %v1938_v40, %v846_v43  ;;  %v889_v40 = vand.u32 2147483647, %v879_v63  ;;  %vm887_vm3 = vmor %vm885_vm2, %vm886_vm1 }
 0x263   :  { %v882_v54 = vsub.f32 1.0, %v881_v8  ;;  %v855_v55 = vsel %vm852_vm15, %v854_v44, %v850_v12  ;;  %v865_v59 = vsel %vm864_vm14, %v1940_v39, %v861_v20  ;;  %v2781_v20 = vld [vmem:[#allocation20_spill] sm:$0xff] }
 0x264   :  { %v870_v53 = vsel %vm867_vm0, %v869_v6, %v865_v59  ;;  %v874_v18 = vmul.f32 %v1944_v34, %v855_v55  ;;  %vm890_vm4 = vcmp.eq.f32.partialorder %v889_v40, 8.507059e+37  ;;  %v2782_v40 = vld [vmem:[#allocation21_spill] sm:$0xff] }
 0x265   :  { %v873_v7 = vmul.f32 %v870_v53, %v2570_v45  ;;  %v883_v47 = vmul.f32 %v1942_v23, %v882_v54 }
 0x267   :  { %v2610_v26 = vadd.f32 %v874_v18, %v873_v7  ;;  %v884_v52 = vadd.f32 %v1942_v23, %v883_v47 }
 0x269   :  { %1945 = vtanh.f32 %v2610_v26  ;;  %v888_v36 = vsel %vm887_vm3, %v1942_v23, %v884_v52 }
 0x26a   :  { %v893_v29 = vsel %vm890_vm4, %v892_v22, %v888_v36 }
 0x26f   :  { %v1946_v39 = vpop.eup %1945 }
 0x270   :  { %v896_v4 = vmul.f32 %v1946_v39, %v893_v29 }
 0x272   :  { %v902_v57 = vpack.c.bf16 %v896_v4, %v896_v4 }
 0x274   :  { %911 = vmatmul.bf16.vlgmr.msra.gmra.mxu0 %v902_v57  ;;  %924 = vmatmul.bf16.vlgmr.msrb.gmra.mxu1 %v902_v57 }
 0x275   :  { %937 = vmatmul.bf16.vlgmr.msra.gmra.mxu2 %v902_v57  ;;  %950 = vmatmul.bf16.vlgmr.msra.gmra.mxu3 %v902_v57 }
 0x276   :  { %1153 = vmatpush.bf16.msra.mxu0 %v2242_v28  ;;  %1166 = vmatpush.bf16.msrb.mxu1 %v2246_v33 }
 0x277   :  { %1179 = vmatpush.bf16.msra.mxu2 %v2253_v38  ;;  %1192 = vmatpush.bf16.msra.mxu3 %v2269_v50 }
 0x27a   :  { %1154 = vmatpush.bf16.msra.mxu0 %v2251_v37  ;;  %1167 = vmatpush.bf16.msrb.mxu1 %v2265_v48 }
 0x27b   :  { %1180 = vmatpush.bf16.msra.mxu2 %v2267_v49  ;;  %1193 = vmatpush.bf16.msra.mxu3 %v2281_v1 }
 0x27e   :  { %1155 = vmatpush.bf16.msra.mxu0 %v2272_v51  ;;  %1168 = vmatpush.bf16.msrb.mxu1 %v2277_v62 }
 0x27f   :  { %1181 = vmatpush.bf16.msra.mxu2 %v2279_v0  ;;  %1194 = vmatpush.bf16.msra.mxu3 %v2287_v10 }
 0x282   :  { %1156 = vmatpush.bf16.msra.mxu0 %v2284_v3  ;;  %1169 = vmatpush.bf16.msrb.mxu1 %v2291_v13 }
 0x283   :  { %1182 = vmatpush.bf16.msra.mxu2 %v2293_v14  ;;  %1195 = vmatpush.bf16.msra.mxu3 %v2303_v21 }
 0x286   :  { %1157 = vmatpush.bf16.msra.mxu0 %v2296_v15  ;;  %1170 = vmatpush.bf16.msrb.mxu1 %v2319_v41 }
 0x287   :  { %1183 = vmatpush.bf16.msra.mxu2 %v2312_v31  ;;  %1196 = vmatpush.bf16.msra.mxu3 %v2322_v42 }
 0x28a   :  { %1158 = vmatpush.bf16.msra.mxu0 %v2306_v24  ;;  %1171 = vmatpush.bf16.msrb.mxu1 %v2330_v58 }
 0x28b   :  { %1184 = vmatpush.bf16.msra.mxu2 %v2327_v46  ;;  %1197 = vmatpush.bf16.msra.mxu3 %v2334_v60 }
 0x28e   :  { %1159 = vmatpush.bf16.msra.mxu0 %v2325_v32  ;;  %1172 = vmatpush.bf16.msrb.mxu1 %v2361_v25 }
 0x28f   :  { %1185 = vmatpush.bf16.msra.mxu2 %v2336_v61  ;;  %1198 = vmatpush.bf16.msra.mxu3 %v2344_v9 }
 0x292   :  { %1160 = vmatpush.bf16.msra.mxu0 %v2339_v2  ;;  %1173 = vmatpush.bf16.msrb.mxu1 %v2367_v27 }
 0x293   :  { %1186 = vmatpush.bf16.msra.mxu2 %v2346_v11  ;;  %1199 = vmatpush.bf16.msra.mxu3 %v2352_v19 }
 0x2f1   :  { %v912_v45 = vpop.f32.mrf.mxu0  ;;  %v925_v63 = vpop.f32.mrf.mxu1 }
 0x2f2   :  { %v955_v35 = vadd.f32 %v912_v45, %v2470_v16  ;;  %v956_v30 = vadd.f32 %v925_v63, %v2780_v56 }
 0x2f4   :  { %v1793_v23 = vmul.f32 -1.442695, %v955_v35  ;;  %v1794_v43 = vmul.f32 -1.442695, %v956_v30 }
 0x2f6   :  { %1947 = vpow2.f32 %v1793_v23 }
 0x2f7   :  { %1949 = vpow2.f32 %v1794_v43 }
 0x2f8   :  { %v938_v8 = vpop.f32.mrf.mxu2  ;;  %v951_v44 = vpop.f32.mrf.mxu3 }
 0x2f9   :  { %v957_v6 = vadd.f32 %v938_v8, %v2781_v20  ;;  %v914_v12 = vpop.f32.mrf.mxu0  ;;  %v927_v34 = vpop.f32.mrf.mxu1  ;;  %v958_v36 = vadd.f32 %v951_v44, %v2782_v40 }
 0x2fb   :  { %v1795_v54 = vmul.f32 -1.442695, %v957_v6 }
 0x2fc   :  { %v1948_v55 = vpop.eup %1947 }
 0x2fd   :  { %v1950_v59 = vpop.eup %1949  ;;  %v965_v53 = vadd.f32 1.0, %v1948_v55  ;;  %1951 = vpow2.f32 %v1795_v54 }
 0x2fe   :  { %v966_v18 = vadd.f32 1.0, %v1950_v59 }
 0x2ff   :  { %1953 = vrcp.f32 %v965_v53  ;;  %v978_v45 = vand.u32 2147483648, %v965_v53  ;;  %v976_v56 = vand.u32 2147483647, %v965_v53  ;;  %vm972_vm7 = vweird.f32 %v965_v53 }
 0x300   :  { %1955 = vrcp.f32 %v966_v18  ;;  %v940_v16 = vpop.f32.mrf.mxu2  ;;  %v953_v7 = vpop.f32.mrf.mxu3  ;;  %v993_v63 = vand.u32 2147483648, %v966_v18  ;;  %v991_v23 = vand.u32 2147483647, %v966_v18  ;;  %vm987_vm8 = vweird.f32 %v966_v18 }
 0x301   :  { %v979_v20 = vor.u32 1.1754944e-38, %v978_v45  ;;  %vm977_vm11 = vcmp.eq.f32.partialorder %v976_v56, 8.507059e+37 }
 0x302   :  { %v994_v12 = vor.u32 1.1754944e-38, %v993_v63  ;;  %vm992_vm12 = vcmp.eq.f32.partialorder %v991_v23, 8.507059e+37 }
 0x303   :  { %v1952_v47 = vpop.eup %1951 }
 0x304   :  { %v1004_v52 = vadd.f32 1.0, %v1952_v47 }
 0x305   :  { %v1954_v5 = vpop.eup %1953 }
 0x306   :  { %v1956_v22 = vpop.eup %1955  ;;  %v968_v39 = vmul.f32 %v1954_v5, %v965_v53  ;;  %1957 = vrcp.f32 %v1004_v52  ;;  %vm973_vm5 = vweird.f32 %v1954_v5  ;;  %vm1010_vm14 = vweird.f32 %v1004_v52 }
 0x307   :  { %v983_v29 = vmul.f32 %v1956_v22, %v966_v18  ;;  %1959 = vtanh.f32 %v958_v36  ;;  %vm988_vm6 = vweird.f32 %v1956_v22  ;;  %vm974_vm9 = vmor %vm972_vm7, %vm973_vm5 }
 0x308   :  { %v969_v4 = vsub.f32 1.0, %v968_v39  ;;  %vm989_vm10 = vmor %vm987_vm8, %vm988_vm6  ;;  %v1016_v39 = vand.u32 2147483648, %v1004_v52 }
 0x309   :  { %v984_v57 = vsub.f32 1.0, %v983_v29 }
 0x30a   :  { %v970_v35 = vmul.f32 %v1954_v5, %v969_v4  ;;  %v1017_v4 = vor.u32 1.1754944e-38, %v1016_v39 }
 0x30b   :  { %v985_v30 = vmul.f32 %v1956_v22, %v984_v57 }
 0x30c   :  { %v1958_v43 = vpop.eup %1957  ;;  %v971_v8 = vadd.f32 %v1954_v5, %v970_v35  ;;  %v2783_v35 = vld [vmem:[#allocation22_spill] sm:$0xff] }
 0x30d   :  { %v1006_v44 = vmul.f32 %v1958_v43, %v1004_v52  ;;  %v986_v6 = vadd.f32 %v1956_v22, %v985_v30  ;;  %v1960_v54 = vpop.eup %1959  ;;  %vm1011_vm13 = vweird.f32 %v1958_v43  ;;  %v2784_v30 = vld [vmem:[#allocation29_spill] sm:$0xff] }
 0x30e   :  { %v975_v34 = vsel %vm974_vm9, %v1954_v5, %v971_v8  ;;  %v1014_v5 = vand.u32 2147483647, %v1004_v52  ;;  %vm1012_vm15 = vmor %vm1010_vm14, %vm1011_vm13 }
 0x30f   :  { %v1007_v55 = vsub.f32 1.0, %v1006_v44  ;;  %v980_v59 = vsel %vm977_vm11, %v979_v20, %v975_v34  ;;  %v990_v16 = vsel %vm989_vm10, %v1956_v22, %v986_v6  ;;  %v2785_v6 = vld [vmem:[#allocation23_spill] sm:$0xff] }
 0x310   :  { %v995_v7 = vsel %vm992_vm12, %v994_v12, %v990_v16  ;;  %v999_v47 = vmul.f32 %v1960_v54, %v980_v59  ;;  %vm1015_vm0 = vcmp.eq.f32.partialorder %v1014_v5, 8.507059e+37 }
 0x311   :  { %v998_v40 = vmul.f32 %v995_v7, %v2610_v26  ;;  %v1008_v36 = vmul.f32 %v1958_v43, %v1007_v55 }
 0x313   :  { %v2650_v53 = vadd.f32 %v999_v47, %v998_v40  ;;  %v1009_v18 = vadd.f32 %v1958_v43, %v1008_v36 }
 0x315   :  { %1961 = vtanh.f32 %v2650_v53  ;;  %v1013_v29 = vsel %vm1012_vm15, %v1958_v43, %v1009_v18 }
 0x316   :  { %v1018_v57 = vsel %vm1015_vm0, %v1017_v4, %v1013_v29  ;;  %v2786_v29 = vld [vmem:[#allocation24_spill] sm:$0xff] }
 0x31b   :  { %v1962_v22 = vpop.eup %1961 }
 0x31c   :  { %v1021_v45 = vmul.f32 %v1962_v22, %v1018_v57 }
 0x31e   :  { %v1027_v63 = vpack.c.bf16 %v1021_v45, %v1021_v45 }
 0x320   :  { %1036 = vmatmul.bf16.vlgmr.msrb.gmra.mxu0 %v1027_v63  ;;  %1049 = vmatmul.bf16.vlgmr.msra.gmra.mxu1 %v1027_v63 }
 0x321   :  { %1062 = vmatmul.bf16.vlgmr.msrb.gmra.mxu2 %v1027_v63  ;;  %1075 = vmatmul.bf16.vlgmr.msrb.gmra.mxu3 %v1027_v63 }
 0x322   :  { %1278 = vmatpush.bf16.msrb.mxu0 %v2242_v28  ;;  %1291 = vmatpush.bf16.msra.mxu1 %v2246_v33 }
 0x323   :  { %1304 = vmatpush.bf16.msrb.mxu2 %v2253_v38  ;;  %1317 = vmatpush.bf16.msrb.mxu3 %v2269_v50 }
 0x326   :  { %1279 = vmatpush.bf16.msrb.mxu0 %v2251_v37  ;;  %1292 = vmatpush.bf16.msra.mxu1 %v2265_v48 }
 0x327   :  { %1305 = vmatpush.bf16.msrb.mxu2 %v2267_v49  ;;  %1318 = vmatpush.bf16.msrb.mxu3 %v2281_v1 }
 0x32a   :  { %1280 = vmatpush.bf16.msrb.mxu0 %v2272_v51  ;;  %1293 = vmatpush.bf16.msra.mxu1 %v2277_v62 }
 0x32b   :  { %1306 = vmatpush.bf16.msrb.mxu2 %v2279_v0  ;;  %1319 = vmatpush.bf16.msrb.mxu3 %v2287_v10 }
 0x32e   :  { %1281 = vmatpush.bf16.msrb.mxu0 %v2284_v3  ;;  %1294 = vmatpush.bf16.msra.mxu1 %v2291_v13 }
 0x32f   :  { %1307 = vmatpush.bf16.msrb.mxu2 %v2293_v14  ;;  %1320 = vmatpush.bf16.msrb.mxu3 %v2303_v21 }
 0x332   :  { %1282 = vmatpush.bf16.msrb.mxu0 %v2296_v15  ;;  %1295 = vmatpush.bf16.msra.mxu1 %v2319_v41 }
 0x333   :  { %1308 = vmatpush.bf16.msrb.mxu2 %v2312_v31  ;;  %1321 = vmatpush.bf16.msrb.mxu3 %v2322_v42 }
 0x336   :  { %1283 = vmatpush.bf16.msrb.mxu0 %v2306_v24  ;;  %1296 = vmatpush.bf16.msra.mxu1 %v2330_v58 }
 0x337   :  { %1309 = vmatpush.bf16.msrb.mxu2 %v2327_v46  ;;  %1322 = vmatpush.bf16.msrb.mxu3 %v2334_v60 }
 0x33a   :  { %1284 = vmatpush.bf16.msrb.mxu0 %v2325_v32  ;;  %1297 = vmatpush.bf16.msra.mxu1 %v2361_v25 }
 0x33b   :  { %1310 = vmatpush.bf16.msrb.mxu2 %v2336_v61  ;;  %1323 = vmatpush.bf16.msrb.mxu3 %v2344_v9 }
 0x33e   :  { %1285 = vmatpush.bf16.msrb.mxu0 %v2339_v2  ;;  %1298 = vmatpush.bf16.msra.mxu1 %v2367_v27 }
 0x33f   :  { %1311 = vmatpush.bf16.msrb.mxu2 %v2346_v11  ;;  %1324 = vmatpush.bf16.msrb.mxu3 %v2352_v19 }
 0x39d   :  { %v1037_v26 = vpop.f32.mrf.mxu0  ;;  %v1050_v52 = vpop.f32.mrf.mxu1 }
 0x39e   :  { %v1080_v56 = vadd.f32 %v1037_v26, %v2783_v35  ;;  %v1081_v23 = vadd.f32 %v1050_v52, %v2784_v30 }
 0x3a0   :  { %v1796_v43 = vmul.f32 -1.442695, %v1080_v56  ;;  %v1797_v8 = vmul.f32 -1.442695, %v1081_v23 }
 0x3a2   :  { %1963 = vpow2.f32 %v1796_v43 }
 0x3a3   :  { %1965 = vpow2.f32 %v1797_v8 }
 0x3a4   :  { %v1063_v44 = vpop.f32.mrf.mxu2  ;;  %v1076_v20 = vpop.f32.mrf.mxu3 }
 0x3a5   :  { %v1082_v12 = vadd.f32 %v1063_v44, %v2785_v6  ;;  %v1039_v34 = vpop.f32.mrf.mxu0  ;;  %v1052_v54 = vpop.f32.mrf.mxu1  ;;  %v1083_v4 = vadd.f32 %v1076_v20, %v2786_v29 }
 0x3a7   :  { %v1798_v55 = vmul.f32 -1.442695, %v1082_v12 }
 0x3a8   :  { %v1964_v59 = vpop.eup %1963 }
 0x3a9   :  { %v1966_v16 = vpop.eup %1965  ;;  %v1090_v7 = vadd.f32 1.0, %v1964_v59  ;;  %1967 = vpow2.f32 %v1798_v55 }
 0x3aa   :  { %v1091_v47 = vadd.f32 1.0, %v1966_v16 }
 0x3ab   :  { %1969 = vrcp.f32 %v1090_v7  ;;  %v1103_v52 = vand.u32 2147483648, %v1090_v7  ;;  %v1101_v30 = vand.u32 2147483647, %v1090_v7  ;;  %vm1097_vm3 = vweird.f32 %v1090_v7 }
 0x3ac   :  { %1971 = vrcp.f32 %v1091_v47  ;;  %v1065_v40 = vpop.f32.mrf.mxu2  ;;  %v1078_v36 = vpop.f32.mrf.mxu3  ;;  %v1118_v35 = vand.u32 2147483648, %v1091_v47  ;;  %v1116_v43 = vand.u32 2147483647, %v1091_v47  ;;  %vm1112_vm4 = vweird.f32 %v1091_v47 }
 0x3ad   :  { %v1104_v6 = vor.u32 1.1754944e-38, %v1103_v52  ;;  %vm1102_vm7 = vcmp.eq.f32.partialorder %v1101_v30, 8.507059e+37 }
 0x3ae   :  { %v1119_v34 = vor.u32 1.1754944e-38, %v1118_v35  ;;  %vm1117_vm8 = vcmp.eq.f32.partialorder %v1116_v43, 8.507059e+37 }
 0x3af   :  { %v1968_v18 = vpop.eup %1967 }
 0x3b0   :  { %v1129_v39 = vadd.f32 1.0, %v1968_v18 }
 0x3b1   :  { %v1970_v5 = vpop.eup %1969 }
 0x3b2   :  { %v1972_v22 = vpop.eup %1971  ;;  %v1093_v57 = vmul.f32 %v1970_v5, %v1090_v7  ;;  %1973 = vrcp.f32 %v1129_v39  ;;  %vm1098_vm1 = vweird.f32 %v1970_v5  ;;  %vm1135_vm10 = vweird.f32 %v1129_v39 }
 0x3b3   :  { %v1108_v45 = vmul.f32 %v1972_v22, %v1091_v47  ;;  %1975 = vtanh.f32 %v1083_v4  ;;  %vm1113_vm2 = vweird.f32 %v1972_v22  ;;  %vm1099_vm5 = vmor %vm1097_vm3, %vm1098_vm1 }
 0x3b4   :  { %v1094_v63 = vsub.f32 1.0, %v1093_v57  ;;  %vm1114_vm6 = vmor %vm1112_vm4, %vm1113_vm2  ;;  %v1141_v57 = vand.u32 2147483648, %v1129_v39 }
 0x3b5   :  { %v1109_v26 = vsub.f32 1.0, %v1108_v45 }
 0x3b6   :  { %v1095_v56 = vmul.f32 %v1970_v5, %v1094_v63  ;;  %v1142_v63 = vor.u32 1.1754944e-38, %v1141_v57 }
 0x3b7   :  { %v1110_v23 = vmul.f32 %v1972_v22, %v1109_v26 }
 0x3b8   :  { %v1974_v8 = vpop.eup %1973  ;;  %v1096_v44 = vadd.f32 %v1970_v5, %v1095_v56 }
 0x3b9   :  { %v1131_v20 = vmul.f32 %v1974_v8, %v1129_v39  ;;  %v1111_v12 = vadd.f32 %v1972_v22, %v1110_v23  ;;  %v1976_v55 = vpop.eup %1975  ;;  %vm1136_vm9 = vweird.f32 %v1974_v8 }
 0x3ba   :  { %v1100_v54 = vsel %vm1099_vm5, %v1970_v5, %v1096_v44  ;;  %v1139_v5 = vand.u32 2147483647, %v1129_v39  ;;  %vm1137_vm11 = vmor %vm1135_vm10, %vm1136_vm9 }
 0x3bb   :  { %v1132_v59 = vsub.f32 1.0, %v1131_v20  ;;  %v1105_v16 = vsel %vm1102_vm7, %v1104_v6, %v1100_v54  ;;  %v1115_v40 = vsel %vm1114_vm6, %v1972_v22, %v1111_v12 }
 0x3bc   :  { %v1120_v36 = vsel %vm1117_vm8, %v1119_v34, %v1115_v40  ;;  %v1124_v18 = vmul.f32 %v1976_v55, %v1105_v16  ;;  %vm1140_vm12 = vcmp.eq.f32.partialorder %v1139_v5, 8.507059e+37 }
 0x3bd   :  { %v1123_v29 = vmul.f32 %v1120_v36, %v2650_v53  ;;  %v1133_v4 = vmul.f32 %v1974_v8, %v1132_v59 }
 0x3bf   :  { %v2690_v7 = vadd.f32 %v1124_v18, %v1123_v29  ;;  %v1134_v47 = vadd.f32 %v1974_v8, %v1133_v4 }
 0x3c1   :  { %1977 = vtanh.f32 %v2690_v7  ;;  %v1138_v45 = vsel %vm1137_vm11, %v1974_v8, %v1134_v47 }
 0x3c2   :  { %v1143_v26 = vsel %vm1140_vm12, %v1142_v63, %v1138_v45 }
 0x3c7   :  { %v1978_v22 = vpop.eup %1977 }
 0x3c8   :  { %v1146_v52 = vmul.f32 %v1978_v22, %v1143_v26 }
 0x3ca   :  { %v1152_v35 = vpack.c.bf16 %v1146_v52, %v1146_v52 }
 0x3cc   :  { %1161 = vmatmul.bf16.vlgmr.msra.gmra.mxu0 %v1152_v35  ;;  %1174 = vmatmul.bf16.vlgmr.msrb.gmra.mxu1 %v1152_v35 }
 0x3cd   :  { %1187 = vmatmul.bf16.vlgmr.msra.gmra.mxu2 %v1152_v35  ;;  %1200 = vmatmul.bf16.vlgmr.msra.gmra.mxu3 %v1152_v35 }
 0x3ce   :  { %1403 = vmatpush.bf16.msra.mxu0 %v2242_v28  ;;  %1416 = vmatpush.bf16.msrb.mxu1 %v2246_v33 }
 0x3cf   :  { %1429 = vmatpush.bf16.msra.mxu2 %v2253_v38  ;;  %1442 = vmatpush.bf16.msra.mxu3 %v2269_v50 }
 0x3d2   :  { %1404 = vmatpush.bf16.msra.mxu0 %v2251_v37  ;;  %1417 = vmatpush.bf16.msrb.mxu1 %v2265_v48  ;;  %v2787_v37 = vld [vmem:[#allocation25_spill] sm:$0xff]  ;;  %v2788_v48 = vld [vmem:[#allocation32_spill] sm:$0xff] }
 0x3d3   :  { %1430 = vmatpush.bf16.msra.mxu2 %v2267_v49  ;;  %1443 = vmatpush.bf16.msra.mxu3 %v2281_v1  ;;  %v2789_v1 = vld [vmem:[#allocation27_spill] sm:$0xff] }
 0x3d6   :  { %1405 = vmatpush.bf16.msra.mxu0 %v2272_v51  ;;  %1418 = vmatpush.bf16.msrb.mxu1 %v2277_v62 }
 0x3d7   :  { %1431 = vmatpush.bf16.msra.mxu2 %v2279_v0  ;;  %1444 = vmatpush.bf16.msra.mxu3 %v2287_v10 }
 0x3da   :  { %1406 = vmatpush.bf16.msra.mxu0 %v2284_v3  ;;  %1419 = vmatpush.bf16.msrb.mxu1 %v2291_v13 }
 0x3db   :  { %1432 = vmatpush.bf16.msra.mxu2 %v2293_v14  ;;  %1445 = vmatpush.bf16.msra.mxu3 %v2303_v21 }
 0x3de   :  { %1407 = vmatpush.bf16.msra.mxu0 %v2296_v15  ;;  %1420 = vmatpush.bf16.msrb.mxu1 %v2319_v41 }
 0x3df   :  { %1433 = vmatpush.bf16.msra.mxu2 %v2312_v31  ;;  %1446 = vmatpush.bf16.msra.mxu3 %v2322_v42 }
 0x3e2   :  { %1408 = vmatpush.bf16.msra.mxu0 %v2306_v24  ;;  %1421 = vmatpush.bf16.msrb.mxu1 %v2330_v58 }
 0x3e3   :  { %1434 = vmatpush.bf16.msra.mxu2 %v2327_v46  ;;  %1447 = vmatpush.bf16.msra.mxu3 %v2334_v60  ;;  %v2790_v60 = vld [vmem:[#allocation28_spill] sm:$0xff] }
 0x3e6   :  { %1409 = vmatpush.bf16.msra.mxu0 %v2325_v32  ;;  %1422 = vmatpush.bf16.msrb.mxu1 %v2361_v25 }
 0x3e7   :  { %1435 = vmatpush.bf16.msra.mxu2 %v2336_v61  ;;  %1448 = vmatpush.bf16.msra.mxu3 %v2344_v9 }
 0x3ea   :  { %1410 = vmatpush.bf16.msra.mxu0 %v2339_v2  ;;  %1423 = vmatpush.bf16.msrb.mxu1 %v2367_v27 }
 0x3eb   :  { %1436 = vmatpush.bf16.msra.mxu2 %v2346_v11  ;;  %1449 = vmatpush.bf16.msra.mxu3 %v2352_v19 }
 0x449   :  { %v1162_v28 = vpop.f32.mrf.mxu0  ;;  %v1175_v33 = vpop.f32.mrf.mxu1 }
 0x44a   :  { %v1205_v38 = vadd.f32 %v1162_v28, %v2787_v37  ;;  %v1206_v49 = vadd.f32 %v1175_v33, %v2788_v48  ;;  %v2791_v33 = vld [vmem:[#allocation18_spill] sm:$0xff] }
 0x44c   :  { %v1799_v50 = vmul.f32 -1.442695, %v1205_v38  ;;  %v1800_v51 = vmul.f32 -1.442695, %v1206_v49  ;;  %v2792_v38 = vld [vmem:[#allocation35_spill] sm:$0xff] }
 0x44e   :  { %1979 = vpow2.f32 %v1799_v50 }
 0x44f   :  { %1981 = vpow2.f32 %v1800_v51 }
 0x450   :  { %v1188_v62 = vpop.f32.mrf.mxu2  ;;  %v1201_v0 = vpop.f32.mrf.mxu3 }
 0x451   :  { %v1207_v3 = vadd.f32 %v1188_v62, %v2789_v1  ;;  %v1164_v10 = vpop.f32.mrf.mxu0  ;;  %v1177_v13 = vpop.f32.mrf.mxu1  ;;  %v1208_v61 = vadd.f32 %v1201_v0, %v2790_v60  ;;  %v2793_v0 = vld [vmem:[#allocation30_spill] sm:$0xff] }
 0x453   :  { %v1801_v14 = vmul.f32 -1.442695, %v1207_v3 }
 0x454   :  { %v1980_v15 = vpop.eup %1979 }
 0x455   :  { %v1982_v21 = vpop.eup %1981  ;;  %v1215_v24 = vadd.f32 1.0, %v1980_v15  ;;  %1983 = vpow2.f32 %v1801_v14 }
 0x456   :  { %v1216_v31 = vadd.f32 1.0, %v1982_v21 }
 0x457   :  { %1985 = vrcp.f32 %v1215_v24  ;;  %v1228_v27 = vand.u32 2147483648, %v1215_v24  ;;  %v1226_v56 = vand.u32 2147483647, %v1215_v24  ;;  %vm1222_vm15 = vweird.f32 %v1215_v24 }
 0x458   :  { %1987 = vrcp.f32 %v1216_v31  ;;  %v1190_v41 = vpop.f32.mrf.mxu2  ;;  %v1203_v42 = vpop.f32.mrf.mxu3  ;;  %v1243_v53 = vand.u32 2147483648, %v1216_v31  ;;  %v1241_v23 = vand.u32 2147483647, %v1216_v31  ;;  %vm1237_vm0 = vweird.f32 %v1216_v31 }
 0x459   :  { %v1229_v20 = vor.u32 1.1754944e-38, %v1228_v27  ;;  %vm1227_vm3 = vcmp.eq.f32.partialorder %v1226_v56, 8.507059e+37 }
 0x45a   :  { %v1244_v12 = vor.u32 1.1754944e-38, %v1243_v53  ;;  %vm1242_vm4 = vcmp.eq.f32.partialorder %v1241_v23, 8.507059e+37 }
 0x45b   :  { %v1984_v32 = vpop.eup %1983 }
 0x45c   :  { %v1254_v46 = vadd.f32 1.0, %v1984_v32 }
 0x45d   :  { %v1986_v58 = vpop.eup %1985 }
 0x45e   :  { %v1988_v2 = vpop.eup %1987  ;;  %v1218_v9 = vmul.f32 %v1986_v58, %v1215_v24  ;;  %1989 = vrcp.f32 %v1254_v46  ;;  %vm1223_vm13 = vweird.f32 %v1986_v58  ;;  %v1266_v57 = vand.u32 2147483648, %v1254_v46 }
 0x45f   :  { %v1233_v11 = vmul.f32 %v1988_v2, %v1216_v31  ;;  %1991 = vtanh.f32 %v1208_v61  ;;  %vm1238_vm14 = vweird.f32 %v1988_v2  ;;  %vm1224_vm1 = vmor %vm1222_vm15, %vm1223_vm13  ;;  %vm1260_vm6 = vweird.f32 %v1254_v46 }
 0x460   :  { %v1219_v19 = vsub.f32 1.0, %v1218_v9  ;;  %vm1239_vm2 = vmor %vm1237_vm0, %vm1238_vm14  ;;  %v1264_v5 = vand.u32 2147483647, %v1254_v46  ;;  %v1267_v63 = vor.u32 1.1754944e-38, %v1266_v57 }
 0x461   :  { %v1234_v25 = vsub.f32 1.0, %v1233_v11 }
 0x462   :  { %v1220_v39 = vmul.f32 %v1986_v58, %v1219_v19  ;;  %vm1265_vm8 = vcmp.eq.f32.partialorder %v1264_v5, 8.507059e+37 }
 0x463   :  { %v1235_v30 = vmul.f32 %v1988_v2, %v1234_v25 }
 0x464   :  { %v1990_v43 = vpop.eup %1989  ;;  %v1221_v8 = vadd.f32 %v1986_v58, %v1220_v39 }
 0x465   :  { %v1256_v44 = vmul.f32 %v1990_v43, %v1254_v46  ;;  %v1236_v6 = vadd.f32 %v1988_v2, %v1235_v30  ;;  %v1992_v54 = vpop.eup %1991  ;;  %vm1261_vm5 = vweird.f32 %v1990_v43 }
 0x466   :  { %v1225_v34 = vsel %vm1224_vm1, %v1986_v58, %v1221_v8  ;;  %vm1262_vm7 = vmor %vm1260_vm6, %vm1261_vm5  ;;  %v2794_v58 = vld [vmem:[#allocation31_spill] sm:$0xff] }
 0x467   :  { %v1257_v55 = vsub.f32 1.0, %v1256_v44  ;;  %v1230_v59 = vsel %vm1227_vm3, %v1229_v20, %v1225_v34  ;;  %v1240_v16 = vsel %vm1239_vm2, %v1988_v2, %v1236_v6 }
 0x468   :  { %v1245_v40 = vsel %vm1242_vm4, %v1244_v12, %v1240_v16  ;;  %v1249_v36 = vmul.f32 %v1992_v54, %v1230_v59 }
 0x469   :  { %v1248_v18 = vmul.f32 %v1245_v40, %v2690_v7  ;;  %v1258_v29 = vmul.f32 %v1990_v43, %v1257_v55 }
 0x46b   :  { %v2730_v4 = vadd.f32 %v1249_v36, %v1248_v18  ;;  %v1259_v47 = vadd.f32 %v1990_v43, %v1258_v29 }
 0x46d   :  { %1993 = vtanh.f32 %v2730_v4  ;;  %v1263_v45 = vsel %vm1262_vm7, %v1990_v43, %v1259_v47 }
 0x46e   :  { %v1268_v26 = vsel %vm1265_vm8, %v1267_v63, %v1263_v45 }
 0x473   :  { %v1994_v22 = vpop.eup %1993 }
 0x474   :  { %v1271_v52 = vmul.f32 %v1994_v22, %v1268_v26 }
 0x476   :  { %v1277_v35 = vpack.c.bf16 %v1271_v52, %v1271_v52 }
 0x478   :  { %1286 = vmatmul.bf16.vlgmr.msrb.gmra.mxu0 %v1277_v35  ;;  %1299 = vmatmul.bf16.vlgmr.msra.gmra.mxu1 %v1277_v35 }
 0x479   :  { %1312 = vmatmul.bf16.vlgmr.msrb.gmra.mxu2 %v1277_v35  ;;  %1325 = vmatmul.bf16.vlgmr.msrb.gmra.mxu3 %v1277_v35 }
 0x4f5   :  { %v1287_v7 = vpop.f32.mrf.mxu0  ;;  %v1300_v28 = vpop.f32.mrf.mxu1 }
 0x4f6   :  { %v1330_v37 = vadd.f32 %v1287_v7, %v2791_v33  ;;  %v1331_v48 = vadd.f32 %v1300_v28, %v2792_v38  ;;  %v1882_v7 = vld [vmem:[#allocation11 + $0x30] sm:$0xff]  ;;  %v1881_v28 = vld [vmem:[#allocation11 + $0x28] sm:$0xff]  ;;  %v1880_v33 = vld [vmem:[#allocation11 + $0x20] sm:$0xff] }
 0x4f7   :  { %v2795_v38 = vld [vmem:[#allocation17_spill] sm:$0xff] }
 0x4f8   :  { %v1802_v49 = vmul.f32 -1.442695, %v1330_v37  ;;  %v1803_v50 = vmul.f32 -1.442695, %v1331_v48  ;;  %v1879_v37 = vld [vmem:[#allocation11 + $0x18] sm:$0xff] }
 0x4f9   :  { %v2796_v48 = vld [vmem:[#allocation19_spill] sm:$0xff] }
 0x4fa   :  { %1995 = vpow2.f32 %v1802_v49  ;;  %v211_v49 = vadd.f32 %v2796_v48, %v2795_v38 }
 0x4fb   :  { %1997 = vpow2.f32 %v1803_v50 }
 0x4fc   :  { %v1313_v51 = vpop.f32.mrf.mxu2  ;;  %v1326_v62 = vpop.f32.mrf.mxu3 }
 0x4fd   :  { %v1332_v1 = vadd.f32 %v1313_v51, %v2793_v0  ;;  %v1289_v3 = vpop.f32.mrf.mxu0  ;;  %v1302_v10 = vpop.f32.mrf.mxu1  ;;  %v1333_v60 = vadd.f32 %v1326_v62, %v2794_v58 }
 0x4ff   :  { %v1804_v13 = vmul.f32 -1.442695, %v1332_v1  ;;  %v1878_v1 = vld [vmem:[#allocation11 + $0x10] sm:$0xff] }
 0x500   :  { %v1996_v14 = vpop.eup %1995 }
 0x501   :  { %v1998_v15 = vpop.eup %1997  ;;  %v1340_v21 = vadd.f32 1.0, %v1996_v14  ;;  %1999 = vpow2.f32 %v1804_v13  ;;  %v1877_v13 = vld [vmem:[#allocation11 + $0x8] sm:$0xff] }
 0x502   :  { %v1341_v24 = vadd.f32 1.0, %v1998_v15 }
 0x503   :  { %2001 = vrcp.f32 %v1340_v21  ;;  %v1353_v25 = vand.u32 2147483648, %v1340_v21  ;;  %v1351_v39 = vand.u32 2147483647, %v1340_v21  ;;  %vm1347_vm11 = vweird.f32 %v1340_v21 }
 0x504   :  { %2003 = vrcp.f32 %v1341_v24  ;;  %v1315_v31 = vpop.f32.mrf.mxu2  ;;  %v1328_v41 = vpop.f32.mrf.mxu3  ;;  %v1368_v27 = vand.u32 2147483648, %v1341_v24  ;;  %v1366_v30 = vand.u32 2147483647, %v1341_v24  ;;  %vm1362_vm12 = vweird.f32 %v1341_v24 }
 0x505   :  { %v1354_v44 = vor.u32 1.1754944e-38, %v1353_v25  ;;  %vm1352_vm15 = vcmp.eq.f32.partialorder %v1351_v39, 8.507059e+37  ;;  %v2798_v25 = vld [vmem:[#allocation34_spill] sm:$0xff] }
 0x506   :  { %v1369_v6 = vor.u32 1.1754944e-38, %v1368_v27  ;;  %vm1367_vm0 = vcmp.eq.f32.partialorder %v1366_v30, 8.507059e+37 }
 0x507   :  { %v2000_v42 = vpop.eup %1999 }
 0x508   :  { %v1379_v32 = vadd.f32 1.0, %v2000_v42  ;;  %v1876_v42 = vld [vmem:[#allocation11] sm:$0xff] }
 0x509   :  { %v2002_v46 = vpop.eup %2001 }
 0x50a   :  { %v2004_v61 = vpop.eup %2003  ;;  %v1343_v2 = vmul.f32 %v2002_v46, %v1340_v21  ;;  %2005 = vrcp.f32 %v1379_v32  ;;  %vm1348_vm9 = vweird.f32 %v2002_v46  ;;  %v1391_v57 = vand.u32 2147483648, %v1379_v32  ;;  %v2797_v21 = vld [vmem:[#allocation33_spill] sm:$0xff] }
 0x50b   :  { %v1358_v9 = vmul.f32 %v2004_v61, %v1341_v24  ;;  %2007 = vtanh.f32 %v1333_v60  ;;  %vm1363_vm10 = vweird.f32 %v2004_v61  ;;  %vm1349_vm13 = vmor %vm1347_vm11, %vm1348_vm9  ;;  %vm1385_vm2 = vweird.f32 %v1379_v32 }
 0x50c   :  { %v1344_v11 = vsub.f32 1.0, %v1343_v2  ;;  %vm1364_vm14 = vmor %vm1362_vm12, %vm1363_vm10  ;;  %v1389_v5 = vand.u32 2147483647, %v1379_v32  ;;  %v1392_v63 = vor.u32 1.1754944e-38, %v1391_v57 }
 0x50d   :  { %v1359_v19 = vsub.f32 1.0, %v1358_v9 }
 0x50e   :  { %v1345_v53 = vmul.f32 %v2002_v46, %v1344_v11  ;;  %vm1390_vm4 = vcmp.eq.f32.partialorder %v1389_v5, 8.507059e+37 }
 0x50f   :  { %v1360_v56 = vmul.f32 %v2004_v61, %v1359_v19 }
 0x510   :  { %v2006_v23 = vpop.eup %2005  ;;  %v1346_v43 = vadd.f32 %v2002_v46, %v1345_v53 }
 0x511   :  { %v1381_v8 = vmul.f32 %v2006_v23, %v1379_v32  ;;  %v1361_v20 = vadd.f32 %v2004_v61, %v1360_v56  ;;  %v2008_v34 = vpop.eup %2007  ;;  %vm1386_vm1 = vweird.f32 %v2006_v23 }
 0x512   :  { %v1350_v12 = vsel %vm1349_vm13, %v2002_v46, %v1346_v43  ;;  %vm1387_vm3 = vmor %vm1385_vm2, %vm1386_vm1 }
 0x513   :  { %v1382_v54 = vsub.f32 1.0, %v1381_v8  ;;  %v1355_v55 = vsel %vm1352_vm15, %v1354_v44, %v1350_v12  ;;  %v1365_v59 = vsel %vm1364_vm14, %v2004_v61, %v1361_v20 }
 0x514   :  { %v1370_v16 = vsel %vm1367_vm0, %v1369_v6, %v1365_v59  ;;  %v1374_v40 = vmul.f32 %v2008_v34, %v1355_v55 }
 0x515   :  { %v1373_v36 = vmul.f32 %v1370_v16, %v2730_v4  ;;  %v1383_v18 = vmul.f32 %v2006_v23, %v1382_v54  ;;  %v1883_v4 = vld [vmem:[#allocation11 + $0x38] sm:$0xff] }
 0x516   :  { %1591 = vmatpush.bf16.msrb.mxu0 %v1883_v4 }
 0x517   :  { %v2738_v29 = vadd.f32 %v1374_v40, %v1373_v36  ;;  %v1384_v47 = vadd.f32 %v2006_v23, %v1383_v18 }
 0x519   :  { %2009 = vtanh.f32 %v2738_v29  ;;  %v1388_v45 = vsel %vm1387_vm3, %v2006_v23, %v1384_v47 }
 0x51a   :  { %v1393_v26 = vsel %vm1390_vm4, %v1392_v63, %v1388_v45  ;;  %1592 = vmatpush.bf16.msrb.mxu0 %v1882_v7 }
 0x51e   :  { %1593 = vmatpush.bf16.msrb.mxu0 %v1881_v28 }
 0x51f   :  { %v2010_v22 = vpop.eup %2009 }
 0x520   :  { %v1396_v52 = vmul.f32 %v2010_v22, %v1393_v26 }
 0x522   :  { %v1402_v35 = vpack.c.bf16 %v1396_v52, %v1396_v52  ;;  %1594 = vmatpush.bf16.msrb.mxu0 %v1880_v33 }
 0x524   :  { %1411 = vmatmul.bf16.vlgmr.msra.gmra.mxu0 %v1402_v35  ;;  %1424 = vmatmul.bf16.vlgmr.msrb.gmra.mxu1 %v1402_v35 }
 0x525   :  { %1437 = vmatmul.bf16.vlgmr.msra.gmra.mxu2 %v1402_v35  ;;  %1450 = vmatmul.bf16.vlgmr.msra.gmra.mxu3 %v1402_v35 }
 0x526   :  { %1595 = vmatpush.bf16.msrb.mxu0 %v1879_v37 }
 0x52a   :  { %1596 = vmatpush.bf16.msrb.mxu0 %v1878_v1 }
 0x52e   :  { %1597 = vmatpush.bf16.msrb.mxu0 %v1877_v13 }
 0x532   :  { %1598 = vmatpush.bf16.msrb.mxu0 %v1876_v42 }
 0x5a1   :  { %v1412_v50 = vpop.f32.mrf.mxu0  ;;  %v1425_v51 = vpop.f32.mrf.mxu1 }
 0x5a2   :  { %v1455_v62 = vadd.f32 %v1412_v50, %v211_v49  ;;  %v1456_v0 = vadd.f32 %v1425_v51, %v2526_v17 }
 0x5a4   :  { %v1805_v3 = vmul.f32 -1.442695, %v1455_v62  ;;  %v1806_v10 = vmul.f32 -1.442695, %v1456_v0 }
 0x5a6   :  { %2011 = vpow2.f32 %v1805_v3 }
 0x5a7   :  { %2013 = vpow2.f32 %v1806_v10 }
 0x5a8   :  { %v1438_v14 = vpop.f32.mrf.mxu2  ;;  %v1451_v15 = vpop.f32.mrf.mxu3 }
 0x5a9   :  { %v1457_v24 = vadd.f32 %v1438_v14, %v2797_v21  ;;  %v1414_v31 = vpop.f32.mrf.mxu0  ;;  %v1427_v41 = vpop.f32.mrf.mxu1  ;;  %v1458_v27 = vadd.f32 %v1451_v15, %v2798_v25 }
 0x5ab   :  { %v1807_v32 = vmul.f32 -1.442695, %v1457_v24 }
 0x5ac   :  { %v2012_v46 = vpop.eup %2011 }
 0x5ad   :  { %v2014_v58 = vpop.eup %2013  ;;  %v1465_v60 = vadd.f32 1.0, %v2012_v46  ;;  %2015 = vpow2.f32 %v1807_v32 }
 0x5ae   :  { %v1466_v17 = vadd.f32 1.0, %v2014_v58 }
 0x5af   :  { %2017 = vrcp.f32 %v1465_v60  ;;  %v1478_v43 = vand.u32 2147483648, %v1465_v60  ;;  %v1476_v20 = vand.u32 2147483647, %v1465_v60  ;;  %vm1472_vm7 = vweird.f32 %v1465_v60 }
 0x5b0   :  { %2019 = vrcp.f32 %v1466_v17  ;;  %v1440_v61 = vpop.f32.mrf.mxu2  ;;  %v1453_v2 = vpop.f32.mrf.mxu3  ;;  %v1493_v8 = vand.u32 2147483648, %v1466_v17  ;;  %v1491_v12 = vand.u32 2147483647, %v1466_v17  ;;  %vm1487_vm8 = vweird.f32 %v1466_v17 }
 0x5b1   :  { %v1479_v59 = vor.u32 1.1754944e-38, %v1478_v43  ;;  %vm1477_vm11 = vcmp.eq.f32.partialorder %v1476_v20, 8.507059e+37 }
 0x5b2   :  { %v1494_v40 = vor.u32 1.1754944e-38, %v1493_v8  ;;  %vm1492_vm12 = vcmp.eq.f32.partialorder %v1491_v12, 8.507059e+37 }
 0x5b3   :  { %v2016_v9 = vpop.eup %2015 }
 0x5b4   :  { %v1504_v11 = vadd.f32 1.0, %v2016_v9 }
 0x5b5   :  { %v2018_v19 = vpop.eup %2017 }
 0x5b6   :  { %v2020_v53 = vpop.eup %2019  ;;  %v1468_v39 = vmul.f32 %v2018_v19, %v1465_v60  ;;  %2021 = vrcp.f32 %v1504_v11  ;;  %vm1473_vm5 = vweird.f32 %v2018_v19  ;;  %v1516_v4 = vand.u32 2147483648, %v1504_v11 }
 0x5b7   :  { %v1483_v56 = vmul.f32 %v2020_v53, %v1466_v17  ;;  %2023 = vtanh.f32 %v1458_v27  ;;  %vm1488_vm6 = vweird.f32 %v2020_v53  ;;  %vm1474_vm9 = vmor %vm1472_vm7, %vm1473_vm5  ;;  %vm1510_vm14 = vweird.f32 %v1504_v11 }
 0x5b8   :  { %v1469_v30 = vsub.f32 1.0, %v1468_v39  ;;  %vm1489_vm10 = vmor %vm1487_vm8, %vm1488_vm6  ;;  %v1514_v7 = vand.u32 2147483647, %v1504_v11  ;;  %v1517_v33 = vor.u32 1.1754944e-38, %v1516_v4 }
 0x5b9   :  { %v1484_v23 = vsub.f32 1.0, %v1483_v56 }
 0x5ba   :  { %v1470_v44 = vmul.f32 %v2018_v19, %v1469_v30  ;;  %vm1515_vm0 = vcmp.eq.f32.partialorder %v1514_v7, 8.507059e+37 }
 0x5bb   :  { %v1485_v6 = vmul.f32 %v2020_v53, %v1484_v23 }
 0x5bc   :  { %v2022_v34 = vpop.eup %2021  ;;  %v1471_v54 = vadd.f32 %v2018_v19, %v1470_v44 }
 0x5bd   :  { %v1506_v55 = vmul.f32 %v2022_v34, %v1504_v11  ;;  %v1486_v16 = vadd.f32 %v2020_v53, %v1485_v6  ;;  %v2024_v18 = vpop.eup %2023  ;;  %vm1511_vm13 = vweird.f32 %v2022_v34 }
 0x5be   :  { %v1475_v36 = vsel %vm1474_vm9, %v2018_v19, %v1471_v54  ;;  %vm1512_vm15 = vmor %vm1510_vm14, %vm1511_vm13 }
 0x5bf   :  { %v1507_v47 = vsub.f32 1.0, %v1506_v55  ;;  %v1480_v57 = vsel %vm1477_vm11, %v1479_v59, %v1475_v36  ;;  %v1490_v5 = vsel %vm1489_vm10, %v2020_v53, %v1486_v16 }
 0x5c0   :  { %v1495_v45 = vsel %vm1492_vm12, %v1494_v40, %v1490_v5  ;;  %v1499_v63 = vmul.f32 %v2024_v18, %v1480_v57 }
 0x5c1   :  { %v1498_v22 = vmul.f32 %v1495_v45, %v2738_v29  ;;  %v1508_v26 = vmul.f32 %v2022_v34, %v1507_v47  ;;  %v1898_v29 = vld [vmem:[%s2758_s5] ss:$0 sm:$0xff] }
 0x5c3   :  { %v1500_v52 = vadd.f32 %v1499_v63, %v1498_v22  ;;  %v1509_v35 = vadd.f32 %v2022_v34, %v1508_v26 }
 0x5c5   :  { %2025 = vtanh.f32 %v1500_v52  ;;  %v1513_v28 = vsel %vm1512_vm15, %v2022_v34, %v1509_v35 }
 0x5c6   :  { %v1518_v38 = vsel %vm1515_vm0, %v1517_v33, %v1513_v28 }
 0x5cb   :  { %v2026_v37 = vpop.eup %2025 }
 0x5cc   :  { %v1521_v48 = vmul.f32 %v2026_v37, %v1518_v38 }
 0x5ce   :  { %v1522_v49 = vpack.c.bf16 %v1521_v48, %v1521_v48 }
 0x5d0   :  { %1599 = vmatmul.bf16.vlgmr.msrb.gmra.mxu0 %v1522_v49 }
 0x64d   :  { %v1600_v50 = vpop.f32.mrf.mxu0 }
 0x64e   :  { %v1601_v51 = vadd.f32 %v1898_v29, %v1600_v50 }
 0x650   :  { %1604 = vst [vmem:[#allocation12] sm:$0xff] %v1601_v51 }
 0x651   :  { %1615 = dma.vmem_to_hbm [thread:$0]  %s1611_s26, 128, %s1613_s29, [#allocation5]  }
 0x655   :  { %v1602_v62 = vpop.f32.mrf.mxu0 }
 0x656   :  { %2177 = dma.done.wait [#allocation5], 128  }
 0x657   :  { %2178 = vsyncadd [#allocation5], 4294967168 }
 0x658   :  { %1620 = vsyncpa [#allocation4], 1 }
 0x659   :  { %1621 = vsyncpa [#allocation7], 1 }
 0x65a   :  { %1622 = vsyncpa [#allocation10], 1 }
 0x65b   :  { %1623 = vsyncpa [#allocation5], 1 }

</bundles_post_ra>
